<compile_context>
chip_gen: v6e
topology: v6e:2x2x1
jax: 0.10.0
libtpu: 0.0.40
codegen_flags: <defaults>
</compile_context>

<pallas_src>
import jax
import jax.numpy as jnp
from jax.experimental import pallas as pl
from jax.experimental.pallas import tpu as pltpu


# --------------------------------------------------------------------------- #
# Kernel: one batch tile -> out_tile = x1_tile @ M1 + x2_tile @ M2 + b_fold
# --------------------------------------------------------------------------- #
def _folded_kernel(x1_ref, x2_ref, m1_ref, m2_ref, b_ref, out_ref):
    acc = jnp.dot(x1_ref[...], m1_ref[...], preferred_element_type=jnp.float32)
    acc = acc + jnp.dot(x2_ref[...], m2_ref[...],
                        preferred_element_type=jnp.float32)
    out_ref[...] = (acc + b_ref[...]).astype(out_ref.dtype)


# --------------------------------------------------------------------------- #
# Helpers
# --------------------------------------------------------------------------- #
def _round_up(x, m):
    return ((x + m - 1) // m) * m


def _num_tensorcores():
    """2 on v7x (megacore), 1 on v5e/v6e.  Conservative fallback is 1."""
    try:
        kind = jax.devices()[0].device_kind.lower()
        if "v7" in kind or "7x" in kind:
            return 2
    except Exception:
        pass
    return 1


_NUM_TC = _num_tensorcores()

# Cap so double-buffered per-step bytes (~2*TB*(D1+D2+n_out)*4) stay well
# under even v5e's 16 MiB default scoped VMEM at these feature dims.
_TB_CAP = 32768


# --------------------------------------------------------------------------- #
# Parameter init (PyTorch-style uniform(-1/sqrt(fan_in), 1/sqrt(fan_in)))
# --------------------------------------------------------------------------- #
def _linear_params(key, fan_in, fan_out):
    kw, kb = jax.random.split(key)
    bound = 1.0 / float(fan_in) ** 0.5
    w = jax.random.uniform(kw, (fan_in, fan_out), jnp.float32, -bound, bound)
    b = jax.random.uniform(kb, (1, fan_out), jnp.float32, -bound, bound)
    return w, b


def init_params(key, d1, d2):
    keys = jax.random.split(key, 11)
    wA, bA = _linear_params(keys[0], d1, 3)        # modelA (synthetic placeholder)
    wB, bB = _linear_params(keys[1], d2, 3)        # modelB (synthetic placeholder)
    wc, bc = _linear_params(keys[2], 6, 128)       # classifier
    w1, b1 = _linear_params(keys[3], 128, 64)      # classifier1
    w2, b2 = _linear_params(keys[4], 64, 32)       # classifier2
    w3, b3 = _linear_params(keys[5], 32, 16)       # classifier3
    wo1, bo1 = _linear_params(keys[6], 16, 2)      # out1
    wo2, bo2 = _linear_params(keys[7], 16, 2)      # out2
    wo3, bo3 = _linear_params(keys[8], 16, 2)      # out3
    wo4, bo4 = _linear_params(keys[9], 16, 2)      # out4
    wo5, bo5 = _linear_params(keys[10], 16, 3)     # out5
    return dict(
        wA=wA, bA=bA, wB=wB, bB=bB,
        wc=wc, bc=bc,
        w1=w1, b1=b1, w2=w2, b2=b2, w3=w3, b3=b3,
        wo1=wo1, bo1=bo1, wo2=wo2, bo2=bo2, wo3=wo3, bo3=bo3,
        wo4=wo4, bo4=bo4, wo5=wo5, bo5=bo5,
    )


# --------------------------------------------------------------------------- #
# Forward: trace-time weight folding + single Pallas call over a batch grid.
# Returns the fused (B, 11) output slab; heads are sliced at the consumer.
# --------------------------------------------------------------------------- #
@jax.jit
def combined_forward_slab(x1, x2, params):
    p = params
    B, D1 = x1.shape
    D2 = x2.shape[1]

    # ---- fold the purely-linear chain at trace time (outside the kernel) ----
    w_head = jnp.concatenate(
        [p["wo1"], p["wo2"], p["wo3"], p["wo4"], p["wo5"]], axis=1)   # (16, 11)
    b_head = jnp.concatenate(
        [p["bo1"], p["bo2"], p["bo3"], p["bo4"], p["bo5"]], axis=1)   # (1, 11)
    t3 = p["w3"] @ w_head                                             # (32, 11)
    t2 = p["w2"] @ t3                                                 # (64, 11)
    t1 = p["w1"] @ t2                                                 # (128, 11)
    tc = p["wc"] @ t1                                                 # (6, 11)
    m1 = p["wA"] @ tc[:3]                                             # (D1, 11)
    m2 = p["wB"] @ tc[3:]                                             # (D2, 11)
    b_fold = (p["bA"] @ tc[:3] + p["bB"] @ tc[3:]
              + p["bc"] @ t1 + p["b1"] @ t2 + p["b2"] @ t3
              + p["b3"] @ w_head + b_head)                            # (1, 11)

    n_out = w_head.shape[1]            # 11 = 2 + 2 + 2 + 2 + 3

    # ---- generation-aware batch tile --------------------------------------
    # One block on single-TC chips (no per-step overhead), two blocks on v7x
    # so dimension_semantics=("parallel",) shards the grid across both cores.
    if _NUM_TC <= 1 or B <= 8:
        tb = B                                  # full-extent dim is always legal
    else:
        tb = _round_up(pl.cdiv(B, _NUM_TC), 8)  # keep (8,128) rule for sub-blocks
    tb = min(tb, _TB_CAP)
    grid = (pl.cdiv(B, tb),)

    out = pl.pallas_call(
        _folded_kernel,
        out_shape=jax.ShapeDtypeStruct((B, n_out), jnp.float32),
        grid=grid,
        in_specs=[
            pl.BlockSpec((tb, D1), lambda i: (i, 0)),       # x1 batch tile
            pl.BlockSpec((tb, D2), lambda i: (i, 0)),       # x2 batch tile
            pl.BlockSpec((D1, n_out), lambda i: (0, 0)),    # M1 (grid-invariant)
            pl.BlockSpec((D2, n_out), lambda i: (0, 0)),    # M2 (grid-invariant)
            pl.BlockSpec((1, n_out), lambda i: (0, 0)),     # folded bias
        ],
        out_specs=pl.BlockSpec((tb, n_out), lambda i: (i, 0)),
        compiler_params=pltpu.CompilerParams(
            dimension_semantics=("parallel",)),
        cost_estimate=pl.CostEstimate(
            flops=2 * B * (D1 + D2) * n_out + B * n_out,
            transcendentals=0,
            bytes_accessed=4 * (B * D1 + B * D2 + B * n_out
                                + D1 * n_out + D2 * n_out + n_out),
        ),
    )(x1, x2, m1, m2, b_fold)

    return out


def combined_forward(x1, x2, params):
    """Module-compatible API: five heads, sliced lazily outside the jit so the
    compiled call does not materialize five tiny masked-store HBM copies."""
    out = combined_forward_slab(x1, x2, params)
    return (out[:, 0:2], out[:, 2:4], out[:, 4:6], out[:, 6:8], out[:, 8:11])


# --------------------------------------------------------------------------- #
# Pure-JAX unfused reference matching the PyTorch forward exactly
# --------------------------------------------------------------------------- #
def _reference(x1, x2, p):
    xa = x1 @ p["wA"] + p["bA"]
    xb = x2 @ p["wB"] + p["bB"]
    x = jnp.concatenate([xa, xb], axis=1)
    h = x @ p["wc"] + p["bc"]
    h = h @ p["w1"] + p["b1"]
    h = h @ p["w2"] + p["b2"]
    h = h @ p["w3"] + p["b3"]
    return (
        h @ p["wo1"] + p["bo1"],
        h @ p["wo2"] + p["bo2"],
        h @ p["wo3"] + p["bo3"],
        h @ p["wo4"] + p["bo4"],
        h @ p["wo5"] + p["bo5"],
    )


if __name__ == "__main__":
    key = jax.random.PRNGKey(0)
    k1, k2, kp = jax.random.split(key, 3)

    # small synthetic shapes (placeholder modelA/modelB feature dims = 8)
    B, D1, D2 = 1024, 8, 8
    x1 = jax.random.normal(k1, (B, D1), jnp.float32)
    x2 = jax.random.normal(k2, (B, D2), jnp.float32)
    params = init_params(kp, D1, D2)

    slab = jax.block_until_ready(combined_forward_slab(x1, x2, params))
    outs = (slab[:, 0:2], slab[:, 2:4], slab[:, 4:6], slab[:, 6:8], slab[:, 8:11])

    refs = _reference(x1, x2, params)
    for o, r in zip(outs, refs):
        assert o.shape == r.shape, (o.shape, r.shape)
        assert jnp.allclose(o, r, atol=1e-4, rtol=1e-4), "mismatch vs reference"

    print("KERNEL_OK")
</pallas_src>

<mosaic_0001>
module attributes {stable_mosaic.version = 11 : i64} {
  func.func @_folded_kernel(%arg0: i32, %arg1: memref<1024x8xf32, #tpu.memory_space<vmem>>, %arg2: memref<1024x8xf32, #tpu.memory_space<vmem>>, %arg3: memref<8x11xf32, #tpu.memory_space<vmem>>, %arg4: memref<8x11xf32, #tpu.memory_space<vmem>>, %arg5: memref<1x11xf32, #tpu.memory_space<vmem>>, %arg6: memref<1024x11xf32, #tpu.memory_space<vmem>>) attributes {dimension_semantics = [#tpu.dimension_semantics<parallel>], iteration_bounds = array<i64: 1>, scalar_prefetch = 0 : i64, scratch_operands = 0 : i64, tpu.core_type = #tpu.core_type<tc>, window_params = [{transform_indices = @transform_0, window_bounds = array<i64: 1024, 8>}, {transform_indices = @transform_1, window_bounds = array<i64: 1024, 8>}, {pipeline_mode = #tpu.pipeline_mode<synchronous>, transform_indices = @transform_2, window_bounds = array<i64: 8, 11>}, {pipeline_mode = #tpu.pipeline_mode<synchronous>, transform_indices = @transform_3, window_bounds = array<i64: 8, 11>}, {pipeline_mode = #tpu.pipeline_mode<synchronous>, transform_indices = @transform_4, window_bounds = array<i64: 1, 11>}, {transform_indices = @transform_5, window_bounds = array<i64: 1024, 11>}]} {
    %c0 = arith.constant 0 : index
    %c0_0 = arith.constant 0 : index
    %0 = vector.load %arg1[%c0, %c0_0] : memref<1024x8xf32, #tpu.memory_space<vmem>>, vector<1024x8xf32>
    %c0_1 = arith.constant 0 : index
    %c0_2 = arith.constant 0 : index
    %1 = vector.load %arg3[%c0_1, %c0_2] : memref<8x11xf32, #tpu.memory_space<vmem>>, vector<8x11xf32>
    %cst = arith.constant dense<0.000000e+00> : vector<1024x11xf32>
    %2 = tpu.matmul %0, %1, %cst {dimension_numbers = #tpu.dot_dimension_numbers<[1], [0], [0], [1], [0, 0, 1, 1], [], []>} : vector<1024x8xf32>, vector<8x11xf32>, vector<1024x11xf32> -> vector<1024x11xf32>
    %c0_3 = arith.constant 0 : index
    %c0_4 = arith.constant 0 : index
    %3 = vector.load %arg2[%c0_3, %c0_4] : memref<1024x8xf32, #tpu.memory_space<vmem>>, vector<1024x8xf32>
    %c0_5 = arith.constant 0 : index
    %c0_6 = arith.constant 0 : index
    %4 = vector.load %arg4[%c0_5, %c0_6] : memref<8x11xf32, #tpu.memory_space<vmem>>, vector<8x11xf32>
    %cst_7 = arith.constant dense<0.000000e+00> : vector<1024x11xf32>
    %5 = tpu.matmul %3, %4, %cst_7 {dimension_numbers = #tpu.dot_dimension_numbers<[1], [0], [0], [1], [0, 0, 1, 1], [], []>} : vector<1024x8xf32>, vector<8x11xf32>, vector<1024x11xf32> -> vector<1024x11xf32>
    %6 = arith.addf %2, %5 : vector<1024x11xf32>
    %c0_8 = arith.constant 0 : index
    %c0_9 = arith.constant 0 : index
    %7 = vector.load %arg5[%c0_8, %c0_9] : memref<1x11xf32, #tpu.memory_space<vmem>>, vector<1x11xf32>
    %8 = vector.broadcast %7 : vector<1x11xf32> to vector<1024x11xf32>
    %9 = arith.addf %6, %8 : vector<1024x11xf32>
    %c0_10 = arith.constant 0 : index
    %c0_11 = arith.constant 0 : index
    %10 = vector.load %arg6[%c0_10, %c0_11] : memref<1024x11xf32, #tpu.memory_space<vmem>>, vector<1024x11xf32>
    tpu.vector_store %arg6[%c0_10, %c0_11], %9 {strides = array<i32>} : memref<1024x11xf32, #tpu.memory_space<vmem>>, vector<1024x11xf32>,
    return
  }
  func.func @transform_0(%arg0: i32) -> (i32, i32) {
    %c0_i32 = arith.constant 0 : i32
    %c0_i32_0 = arith.constant 0 : i32
    return %arg0, %c0_i32 : i32, i32
  }
  func.func @transform_1(%arg0: i32) -> (i32, i32) {
    %c0_i32 = arith.constant 0 : i32
    %c0_i32_0 = arith.constant 0 : i32
    return %arg0, %c0_i32 : i32, i32
  }
  func.func @transform_2(%arg0: i32) -> (i32, i32) {
    %c0_i32 = arith.constant 0 : i32
    %c0_i32_0 = arith.constant 0 : i32
    %c0_i32_1 = arith.constant 0 : i32
    return %c0_i32, %c0_i32_0 : i32, i32
  }
  func.func @transform_3(%arg0: i32) -> (i32, i32) {
    %c0_i32 = arith.constant 0 : i32
    %c0_i32_0 = arith.constant 0 : i32
    %c0_i32_1 = arith.constant 0 : i32
    return %c0_i32, %c0_i32_0 : i32, i32
  }
  func.func @transform_4(%arg0: i32) -> (i32, i32) {
    %c0_i32 = arith.constant 0 : i32
    %c0_i32_0 = arith.constant 0 : i32
    %c0_i32_1 = arith.constant 0 : i32
    return %c0_i32, %c0_i32_0 : i32, i32
  }
  func.func @transform_5(%arg0: i32) -> (i32, i32) {
    %c0_i32 = arith.constant 0 : i32
    %c0_i32_0 = arith.constant 0 : i32
    return %arg0, %c0_i32 : i32, i32
  }
}

</mosaic_0001>

<bundles_post_ra>
// kernel: combined_forward_slab.1
= control target key start
LH: loop header
LB: loop body
LE: loop exit
PB: predicated region body
PF: predicated region fallthrough
CT: control target
= control target key end

     0   :  { %vm278_vm0 = vcmask 64512   ;;  %vm2592_vm1 = vcmask 89088   ;;  %s5339_s3 = inlined_call_operand.vmem [shape: f32[8,11], index: 3, kind: input, shape index: {}]   ;;  %s5340_s2 = inlined_call_operand.vmem [shape: f32[8,11], index: 2, kind: input, shape index: {}]   ;;  %s5341_s1 = inlined_call_operand.vmem [shape: f32[1024,8], index: 1, kind: input, shape index: {}]   ;;  %s5342_s0 = inlined_call_operand.vmem [shape: f32[1024,8], index: 0, kind: input, shape index: {}]   ;;  %s5343_s4 = inlined_call_operand.vmem [shape: f32[1,11], index: 4, kind: input, shape index: {}]   ;;  %s5344_s5 = inlined_call_operand.vmem [shape: f32[1024,11], index: 5, kind: output, shape index: {}]  }
   0x1   :  { %v277_v0 = vld [vmem:[%s5339_s3] sm:$0xff]  ;;  %v150_v4 = vld [vmem:[%s5341_s1 + $0x8] sm:$0xff]  ;;  %v151_v6 = vld [vmem:[%s5341_s1 + $0x10] sm:$0xff] }
   0x2   :  { %v148_v1 = vld [vmem:[%s5340_s2] sm:$0xff]  ;;  %3240 = vmatprep.subr.mxu0 %v277_v0  ;;  %v21_v5 = vld [vmem:[%s5342_s0 + $0x8] sm:$0xff]  ;;  %v22_v7 = vld [vmem:[%s5342_s0 + $0x10] sm:$0xff] }
   0x3   :  { %v149_v2 = vld [vmem:[%s5341_s1] sm:$0xff]  ;;  %3434 = vmatprep.subr.mxu1 %v148_v1  ;;  %3241 = vmatpush3.msra.mxu0 %v277_v0  ;;  %v152_v8 = vld [vmem:[%s5341_s1 + $0x18] sm:$0xff]  ;;  %v154_v12 = vld [vmem:[%s5341_s1 + $0x28] sm:$0xff] }
   0x4   :  { %v20_v3 = vld [vmem:[%s5342_s0] sm:$0xff]  ;;  %3242 = vmatprep.mubr.msk.f32.mxu0 %vm278_vm0, %v149_v2  ;;  %3435 = vmatpush3.msra.mxu1 %v148_v1  ;;  %v23_v9 = vld [vmem:[%s5342_s0 + $0x18] sm:$0xff]  ;;  %v25_v13 = vld [vmem:[%s5342_s0 + $0x28] sm:$0xff] }
   0x5   :  { %3436 = vmatprep.mubr.msk.f32.mxu1 %vm278_vm0, %v20_v3  ;;  %3243 = vmatmul.mubr.msk.f32.vlgmr.msra.gmra.mxu0 %vm278_vm0, %v150_v4  ;;  %v153_v10 = vld [vmem:[%s5341_s1 + $0x20] sm:$0xff]  ;;  %v155_v14 = vld [vmem:[%s5341_s1 + $0x30] sm:$0xff]  ;;  %v156_v16 = vld [vmem:[%s5341_s1 + $0x38] sm:$0xff] }
   0x6   :  { %3437 = vmatmul.mubr.msk.f32.vlgmr.msra.gmra.mxu1 %vm278_vm0, %v21_v5  ;;  %3245 = vmatprep.mubr.msk.f32.mxu0 %vm278_vm0, %v151_v6  ;;  %v24_v11 = vld [vmem:[%s5342_s0 + $0x20] sm:$0xff]  ;;  %v26_v15 = vld [vmem:[%s5342_s0 + $0x30] sm:$0xff]  ;;  %v27_v17 = vld [vmem:[%s5342_s0 + $0x38] sm:$0xff] }
   0x7   :  { %3439 = vmatprep.mubr.msk.f32.mxu1 %vm278_vm0, %v22_v7  ;;  %v157_v18 = vld [vmem:[%s5341_s1 + $0x40] sm:$0xff]  ;;  %v158_v20 = vld [vmem:[%s5341_s1 + $0x48] sm:$0xff]  ;;  %v159_v22 = vld [vmem:[%s5341_s1 + $0x50] sm:$0xff] }
   0x8   :  { %v28_v19 = vld [vmem:[%s5342_s0 + $0x40] sm:$0xff]  ;;  %v29_v21 = vld [vmem:[%s5342_s0 + $0x48] sm:$0xff]  ;;  %v30_v23 = vld [vmem:[%s5342_s0 + $0x50] sm:$0xff] }
   0x9   :  { %3246 = vmatmul.mubr.msk.f32.gmra.mxu0 %vm278_vm0, %v152_v8  ;;  %v160_v24 = vld [vmem:[%s5341_s1 + $0x58] sm:$0xff]  ;;  %v161_v26 = vld [vmem:[%s5341_s1 + $0x60] sm:$0xff]  ;;  %v162_v28 = vld [vmem:[%s5341_s1 + $0x68] sm:$0xff] }
   0xa   :  { %3440 = vmatmul.mubr.msk.f32.gmra.mxu1 %vm278_vm0, %v23_v9  ;;  %3248 = vmatprep.mubr.msk.f32.mxu0 %vm278_vm0, %v153_v10  ;;  %v31_v25 = vld [vmem:[%s5342_s0 + $0x58] sm:$0xff]  ;;  %v32_v27 = vld [vmem:[%s5342_s0 + $0x60] sm:$0xff]  ;;  %v33_v29 = vld [vmem:[%s5342_s0 + $0x68] sm:$0xff] }
   0xb   :  { %3442 = vmatprep.mubr.msk.f32.mxu1 %vm278_vm0, %v24_v11  ;;  %v163_v30 = vld [vmem:[%s5341_s1 + $0x70] sm:$0xff]  ;;  %v164_v32 = vld [vmem:[%s5341_s1 + $0x78] sm:$0xff]  ;;  %v165_v34 = vld [vmem:[%s5341_s1 + $0x80] sm:$0xff] }
   0xc   :  { %v34_v31 = vld [vmem:[%s5342_s0 + $0x70] sm:$0xff]  ;;  %v35_v33 = vld [vmem:[%s5342_s0 + $0x78] sm:$0xff]  ;;  %v36_v35 = vld [vmem:[%s5342_s0 + $0x80] sm:$0xff] }
   0xd   :  { %3249 = vmatmul.mubr.msk.f32.gmra.mxu0 %vm278_vm0, %v154_v12  ;;  %v166_v36 = vld [vmem:[%s5341_s1 + $0x88] sm:$0xff]  ;;  %v167_v38 = vld [vmem:[%s5341_s1 + $0x90] sm:$0xff]  ;;  %v168_v40 = vld [vmem:[%s5341_s1 + $0x98] sm:$0xff] }
   0xe   :  { %3443 = vmatmul.mubr.msk.f32.gmra.mxu1 %vm278_vm0, %v25_v13  ;;  %3251 = vmatprep.mubr.msk.f32.mxu0 %vm278_vm0, %v155_v14  ;;  %v37_v37 = vld [vmem:[%s5342_s0 + $0x88] sm:$0xff]  ;;  %v38_v39 = vld [vmem:[%s5342_s0 + $0x90] sm:$0xff]  ;;  %v39_v41 = vld [vmem:[%s5342_s0 + $0x98] sm:$0xff] }
   0xf   :  { %3445 = vmatprep.mubr.msk.f32.mxu1 %vm278_vm0, %v26_v15  ;;  %v169_v42 = vld [vmem:[%s5341_s1 + $0xa0] sm:$0xff]  ;;  %v170_v44 = vld [vmem:[%s5341_s1 + $0xa8] sm:$0xff]  ;;  %v171_v46 = vld [vmem:[%s5341_s1 + $0xb0] sm:$0xff] }
  0x10   :  { %v40_v43 = vld [vmem:[%s5342_s0 + $0xa0] sm:$0xff]  ;;  %v41_v45 = vld [vmem:[%s5342_s0 + $0xa8] sm:$0xff]  ;;  %v42_v47 = vld [vmem:[%s5342_s0 + $0xb0] sm:$0xff] }
  0x11   :  { %3252 = vmatmul.mubr.msk.f32.gmra.mxu0 %vm278_vm0, %v156_v16  ;;  %v172_v48 = vld [vmem:[%s5341_s1 + $0xb8] sm:$0xff]  ;;  %v173_v50 = vld [vmem:[%s5341_s1 + $0xc0] sm:$0xff]  ;;  %v174_v52 = vld [vmem:[%s5341_s1 + $0xc8] sm:$0xff] }
  0x12   :  { %3446 = vmatmul.mubr.msk.f32.gmra.mxu1 %vm278_vm0, %v27_v17  ;;  %3254 = vmatprep.mubr.msk.f32.mxu0 %vm278_vm0, %v157_v18  ;;  %v43_v49 = vld [vmem:[%s5342_s0 + $0xb8] sm:$0xff]  ;;  %v44_v51 = vld [vmem:[%s5342_s0 + $0xc0] sm:$0xff]  ;;  %v45_v53 = vld [vmem:[%s5342_s0 + $0xc8] sm:$0xff] }
  0x13   :  { %3448 = vmatprep.mubr.msk.f32.mxu1 %vm278_vm0, %v28_v19  ;;  %v175_v54 = vld [vmem:[%s5341_s1 + $0xd0] sm:$0xff]  ;;  %v176_v56 = vld [vmem:[%s5341_s1 + $0xd8] sm:$0xff]  ;;  %v177_v58 = vld [vmem:[%s5341_s1 + $0xe0] sm:$0xff] }
  0x14   :  { %v46_v55 = vld [vmem:[%s5342_s0 + $0xd0] sm:$0xff]  ;;  %v47_v57 = vld [vmem:[%s5342_s0 + $0xd8] sm:$0xff]  ;;  %v48_v59 = vld [vmem:[%s5342_s0 + $0xe0] sm:$0xff] }
  0x15   :  { %3255 = vmatmul.mubr.msk.f32.gmra.mxu0 %vm278_vm0, %v158_v20  ;;  %v178_v60 = vld [vmem:[%s5341_s1 + $0xe8] sm:$0xff]  ;;  %v179_v62 = vld [vmem:[%s5341_s1 + $0xf0] sm:$0xff]  ;;  %v180_v0 = vld [vmem:[%s5341_s1 + $0xf8] sm:$0xff] }
  0x16   :  { %3449 = vmatmul.mubr.msk.f32.gmra.mxu1 %vm278_vm0, %v29_v21  ;;  %3257 = vmatprep.mubr.msk.f32.mxu0 %vm278_vm0, %v159_v22  ;;  %v49_v61 = vld [vmem:[%s5342_s0 + $0xe8] sm:$0xff]  ;;  %v50_v63 = vld [vmem:[%s5342_s0 + $0xf0] sm:$0xff]  ;;  %v51_v1 = vld [vmem:[%s5342_s0 + $0xf8] sm:$0xff] }
  0x17   :  { %3451 = vmatprep.mubr.msk.f32.mxu1 %vm278_vm0, %v30_v23  ;;  %v181_v2 = vld [vmem:[%s5341_s1 + $0x100] sm:$0xff]  ;;  %v182_v4 = vld [vmem:[%s5341_s1 + $0x108] sm:$0xff]  ;;  %v183_v6 = vld [vmem:[%s5341_s1 + $0x110] sm:$0xff] }
  0x18   :  { %v52_v3 = vld [vmem:[%s5342_s0 + $0x100] sm:$0xff]  ;;  %v53_v5 = vld [vmem:[%s5342_s0 + $0x108] sm:$0xff]  ;;  %v54_v7 = vld [vmem:[%s5342_s0 + $0x110] sm:$0xff] }
  0x19   :  { %3258 = vmatmul.mubr.msk.f32.gmra.mxu0 %vm278_vm0, %v160_v24  ;;  %v184_v8 = vld [vmem:[%s5341_s1 + $0x118] sm:$0xff]  ;;  %v185_v10 = vld [vmem:[%s5341_s1 + $0x120] sm:$0xff]  ;;  %v186_v12 = vld [vmem:[%s5341_s1 + $0x128] sm:$0xff] }
  0x1a   :  { %3452 = vmatmul.mubr.msk.f32.gmra.mxu1 %vm278_vm0, %v31_v25  ;;  %3260 = vmatprep.mubr.msk.f32.mxu0 %vm278_vm0, %v161_v26  ;;  %v55_v9 = vld [vmem:[%s5342_s0 + $0x118] sm:$0xff]  ;;  %v56_v11 = vld [vmem:[%s5342_s0 + $0x120] sm:$0xff]  ;;  %v57_v13 = vld [vmem:[%s5342_s0 + $0x128] sm:$0xff] }
  0x1b   :  { %3454 = vmatprep.mubr.msk.f32.mxu1 %vm278_vm0, %v32_v27  ;;  %v187_v14 = vld [vmem:[%s5341_s1 + $0x130] sm:$0xff]  ;;  %v188_v16 = vld [vmem:[%s5341_s1 + $0x138] sm:$0xff]  ;;  %v189_v18 = vld [vmem:[%s5341_s1 + $0x140] sm:$0xff] }
  0x1c   :  { %v58_v15 = vld [vmem:[%s5342_s0 + $0x130] sm:$0xff]  ;;  %v59_v17 = vld [vmem:[%s5342_s0 + $0x138] sm:$0xff]  ;;  %v60_v19 = vld [vmem:[%s5342_s0 + $0x140] sm:$0xff] }
  0x1d   :  { %3261 = vmatmul.mubr.msk.f32.gmra.mxu0 %vm278_vm0, %v162_v28  ;;  %v190_v20 = vld [vmem:[%s5341_s1 + $0x148] sm:$0xff]  ;;  %v191_v22 = vld [vmem:[%s5341_s1 + $0x150] sm:$0xff]  ;;  %v192_v24 = vld [vmem:[%s5341_s1 + $0x158] sm:$0xff] }
  0x1e   :  { %3455 = vmatmul.mubr.msk.f32.gmra.mxu1 %vm278_vm0, %v33_v29  ;;  %3263 = vmatprep.mubr.msk.f32.mxu0 %vm278_vm0, %v163_v30  ;;  %v61_v21 = vld [vmem:[%s5342_s0 + $0x148] sm:$0xff]  ;;  %v62_v23 = vld [vmem:[%s5342_s0 + $0x150] sm:$0xff]  ;;  %v63_v25 = vld [vmem:[%s5342_s0 + $0x158] sm:$0xff] }
  0x1f   :  { %3457 = vmatprep.mubr.msk.f32.mxu1 %vm278_vm0, %v34_v31  ;;  %v193_v26 = vld [vmem:[%s5341_s1 + $0x160] sm:$0xff]  ;;  %v194_v28 = vld [vmem:[%s5341_s1 + $0x168] sm:$0xff]  ;;  %v195_v30 = vld [vmem:[%s5341_s1 + $0x170] sm:$0xff] }
  0x20   :  { %v64_v27 = vld [vmem:[%s5342_s0 + $0x160] sm:$0xff]  ;;  %v65_v29 = vld [vmem:[%s5342_s0 + $0x168] sm:$0xff]  ;;  %v66_v31 = vld [vmem:[%s5342_s0 + $0x170] sm:$0xff] }
  0x21   :  { %3264 = vmatmul.mubr.msk.f32.gmra.mxu0 %vm278_vm0, %v164_v32  ;;  %v196_v32 = vld [vmem:[%s5341_s1 + $0x178] sm:$0xff] }
  0x22   :  { %3458 = vmatmul.mubr.msk.f32.gmra.mxu1 %vm278_vm0, %v35_v33  ;;  %3266 = vmatprep.mubr.msk.f32.mxu0 %vm278_vm0, %v165_v34  ;;  %v67_v33 = vld [vmem:[%s5342_s0 + $0x178] sm:$0xff]  ;;  %v197_v34 = vld [vmem:[%s5341_s1 + $0x180] sm:$0xff] }
  0x23   :  { %3460 = vmatprep.mubr.msk.f32.mxu1 %vm278_vm0, %v36_v35  ;;  %v68_v35 = vld [vmem:[%s5342_s0 + $0x180] sm:$0xff] }
  0x25   :  { %3267 = vmatmul.mubr.msk.f32.gmra.mxu0 %vm278_vm0, %v166_v36  ;;  %v198_v36 = vld [vmem:[%s5341_s1 + $0x188] sm:$0xff] }
  0x26   :  { %3461 = vmatmul.mubr.msk.f32.gmra.mxu1 %vm278_vm0, %v37_v37  ;;  %3269 = vmatprep.mubr.msk.f32.mxu0 %vm278_vm0, %v167_v38  ;;  %v69_v37 = vld [vmem:[%s5342_s0 + $0x188] sm:$0xff]  ;;  %v199_v38 = vld [vmem:[%s5341_s1 + $0x190] sm:$0xff] }
  0x27   :  { %3463 = vmatprep.mubr.msk.f32.mxu1 %vm278_vm0, %v38_v39  ;;  %v70_v39 = vld [vmem:[%s5342_s0 + $0x190] sm:$0xff] }
  0x29   :  { %3270 = vmatmul.mubr.msk.f32.gmra.mxu0 %vm278_vm0, %v168_v40  ;;  %v200_v40 = vld [vmem:[%s5341_s1 + $0x198] sm:$0xff] }
  0x2a   :  { %3464 = vmatmul.mubr.msk.f32.gmra.mxu1 %vm278_vm0, %v39_v41  ;;  %3272 = vmatprep.mubr.msk.f32.mxu0 %vm278_vm0, %v169_v42  ;;  %v71_v41 = vld [vmem:[%s5342_s0 + $0x198] sm:$0xff]  ;;  %v201_v42 = vld [vmem:[%s5341_s1 + $0x1a0] sm:$0xff] }
  0x2b   :  { %3466 = vmatprep.mubr.msk.f32.mxu1 %vm278_vm0, %v40_v43  ;;  %v72_v43 = vld [vmem:[%s5342_s0 + $0x1a0] sm:$0xff] }
  0x2d   :  { %3273 = vmatmul.mubr.msk.f32.gmra.mxu0 %vm278_vm0, %v170_v44  ;;  %v202_v44 = vld [vmem:[%s5341_s1 + $0x1a8] sm:$0xff] }
  0x2e   :  { %3467 = vmatmul.mubr.msk.f32.gmra.mxu1 %vm278_vm0, %v41_v45  ;;  %3275 = vmatprep.mubr.msk.f32.mxu0 %vm278_vm0, %v171_v46  ;;  %v73_v45 = vld [vmem:[%s5342_s0 + $0x1a8] sm:$0xff]  ;;  %v203_v46 = vld [vmem:[%s5341_s1 + $0x1b0] sm:$0xff] }
  0x2f   :  { %3469 = vmatprep.mubr.msk.f32.mxu1 %vm278_vm0, %v42_v47  ;;  %v74_v47 = vld [vmem:[%s5342_s0 + $0x1b0] sm:$0xff] }
  0x31   :  { %3276 = vmatmul.mubr.msk.f32.gmra.mxu0 %vm278_vm0, %v172_v48  ;;  %v204_v48 = vld [vmem:[%s5341_s1 + $0x1b8] sm:$0xff] }
  0x32   :  { %3470 = vmatmul.mubr.msk.f32.gmra.mxu1 %vm278_vm0, %v43_v49  ;;  %3278 = vmatprep.mubr.msk.f32.mxu0 %vm278_vm0, %v173_v50  ;;  %v75_v49 = vld [vmem:[%s5342_s0 + $0x1b8] sm:$0xff]  ;;  %v205_v50 = vld [vmem:[%s5341_s1 + $0x1c0] sm:$0xff] }
  0x33   :  { %3472 = vmatprep.mubr.msk.f32.mxu1 %vm278_vm0, %v44_v51  ;;  %v76_v51 = vld [vmem:[%s5342_s0 + $0x1c0] sm:$0xff] }
  0x35   :  { %3279 = vmatmul.mubr.msk.f32.gmra.mxu0 %vm278_vm0, %v174_v52  ;;  %v206_v52 = vld [vmem:[%s5341_s1 + $0x1c8] sm:$0xff] }
  0x36   :  { %3473 = vmatmul.mubr.msk.f32.gmra.mxu1 %vm278_vm0, %v45_v53  ;;  %3281 = vmatprep.mubr.msk.f32.mxu0 %vm278_vm0, %v175_v54  ;;  %v77_v53 = vld [vmem:[%s5342_s0 + $0x1c8] sm:$0xff]  ;;  %v207_v54 = vld [vmem:[%s5341_s1 + $0x1d0] sm:$0xff] }
  0x37   :  { %3475 = vmatprep.mubr.msk.f32.mxu1 %vm278_vm0, %v46_v55  ;;  %v78_v55 = vld [vmem:[%s5342_s0 + $0x1d0] sm:$0xff] }
  0x39   :  { %3282 = vmatmul.mubr.msk.f32.gmra.mxu0 %vm278_vm0, %v176_v56  ;;  %v208_v56 = vld [vmem:[%s5341_s1 + $0x1d8] sm:$0xff] }
  0x3a   :  { %3476 = vmatmul.mubr.msk.f32.gmra.mxu1 %vm278_vm0, %v47_v57  ;;  %3284 = vmatprep.mubr.msk.f32.mxu0 %vm278_vm0, %v177_v58  ;;  %v79_v57 = vld [vmem:[%s5342_s0 + $0x1d8] sm:$0xff]  ;;  %v209_v58 = vld [vmem:[%s5341_s1 + $0x1e0] sm:$0xff] }
  0x3b   :  { %3478 = vmatprep.mubr.msk.f32.mxu1 %vm278_vm0, %v48_v59  ;;  %v80_v59 = vld [vmem:[%s5342_s0 + $0x1e0] sm:$0xff] }
  0x3d   :  { %3285 = vmatmul.mubr.msk.f32.gmra.mxu0 %vm278_vm0, %v178_v60  ;;  %v210_v60 = vld [vmem:[%s5341_s1 + $0x1e8] sm:$0xff] }
  0x3e   :  { %3479 = vmatmul.mubr.msk.f32.gmra.mxu1 %vm278_vm0, %v49_v61  ;;  %3287 = vmatprep.mubr.msk.f32.mxu0 %vm278_vm0, %v179_v62  ;;  %v81_v61 = vld [vmem:[%s5342_s0 + $0x1e8] sm:$0xff]  ;;  %v211_v62 = vld [vmem:[%s5341_s1 + $0x1f0] sm:$0xff] }
  0x3f   :  { %3481 = vmatprep.mubr.msk.f32.mxu1 %vm278_vm0, %v50_v63  ;;  %v82_v63 = vld [vmem:[%s5342_s0 + $0x1f0] sm:$0xff] }
  0x41   :  { %3288 = vmatmul.mubr.msk.f32.gmra.mxu0 %vm278_vm0, %v180_v0  ;;  %v212_v0 = vld [vmem:[%s5341_s1 + $0x1f8] sm:$0xff] }
  0x42   :  { %3482 = vmatmul.mubr.msk.f32.gmra.mxu1 %vm278_vm0, %v51_v1  ;;  %3290 = vmatprep.mubr.msk.f32.mxu0 %vm278_vm0, %v181_v2  ;;  %v83_v1 = vld [vmem:[%s5342_s0 + $0x1f8] sm:$0xff]  ;;  %v213_v2 = vld [vmem:[%s5341_s1 + $0x200] sm:$0xff] }
  0x43   :  { %3484 = vmatprep.mubr.msk.f32.mxu1 %vm278_vm0, %v52_v3  ;;  %v84_v3 = vld [vmem:[%s5342_s0 + $0x200] sm:$0xff] }
  0x45   :  { %3291 = vmatmul.mubr.msk.f32.gmra.mxu0 %vm278_vm0, %v182_v4  ;;  %v214_v4 = vld [vmem:[%s5341_s1 + $0x208] sm:$0xff] }
  0x46   :  { %3485 = vmatmul.mubr.msk.f32.gmra.mxu1 %vm278_vm0, %v53_v5  ;;  %3293 = vmatprep.mubr.msk.f32.mxu0 %vm278_vm0, %v183_v6  ;;  %v85_v5 = vld [vmem:[%s5342_s0 + $0x208] sm:$0xff]  ;;  %v215_v6 = vld [vmem:[%s5341_s1 + $0x210] sm:$0xff] }
  0x47   :  { %3487 = vmatprep.mubr.msk.f32.mxu1 %vm278_vm0, %v54_v7  ;;  %v86_v7 = vld [vmem:[%s5342_s0 + $0x210] sm:$0xff] }
  0x49   :  { %3294 = vmatmul.mubr.msk.f32.gmra.mxu0 %vm278_vm0, %v184_v8  ;;  %v216_v8 = vld [vmem:[%s5341_s1 + $0x218] sm:$0xff] }
  0x4a   :  { %3488 = vmatmul.mubr.msk.f32.gmra.mxu1 %vm278_vm0, %v55_v9  ;;  %3296 = vmatprep.mubr.msk.f32.mxu0 %vm278_vm0, %v185_v10  ;;  %v87_v9 = vld [vmem:[%s5342_s0 + $0x218] sm:$0xff]  ;;  %v217_v10 = vld [vmem:[%s5341_s1 + $0x220] sm:$0xff] }
  0x4b   :  { %3490 = vmatprep.mubr.msk.f32.mxu1 %vm278_vm0, %v56_v11  ;;  %v88_v11 = vld [vmem:[%s5342_s0 + $0x220] sm:$0xff] }
  0x4d   :  { %3297 = vmatmul.mubr.msk.f32.gmra.mxu0 %vm278_vm0, %v186_v12  ;;  %v218_v12 = vld [vmem:[%s5341_s1 + $0x228] sm:$0xff] }
  0x4e   :  { %3491 = vmatmul.mubr.msk.f32.gmra.mxu1 %vm278_vm0, %v57_v13  ;;  %3299 = vmatprep.mubr.msk.f32.mxu0 %vm278_vm0, %v187_v14  ;;  %v89_v13 = vld [vmem:[%s5342_s0 + $0x228] sm:$0xff]  ;;  %v219_v14 = vld [vmem:[%s5341_s1 + $0x230] sm:$0xff] }
  0x4f   :  { %3493 = vmatprep.mubr.msk.f32.mxu1 %vm278_vm0, %v58_v15  ;;  %v90_v15 = vld [vmem:[%s5342_s0 + $0x230] sm:$0xff] }
  0x51   :  { %3300 = vmatmul.mubr.msk.f32.gmra.mxu0 %vm278_vm0, %v188_v16  ;;  %v220_v16 = vld [vmem:[%s5341_s1 + $0x238] sm:$0xff] }
  0x52   :  { %3494 = vmatmul.mubr.msk.f32.gmra.mxu1 %vm278_vm0, %v59_v17  ;;  %3302 = vmatprep.mubr.msk.f32.mxu0 %vm278_vm0, %v189_v18  ;;  %v91_v17 = vld [vmem:[%s5342_s0 + $0x238] sm:$0xff]  ;;  %v221_v18 = vld [vmem:[%s5341_s1 + $0x240] sm:$0xff] }
  0x53   :  { %3496 = vmatprep.mubr.msk.f32.mxu1 %vm278_vm0, %v60_v19  ;;  %v92_v19 = vld [vmem:[%s5342_s0 + $0x240] sm:$0xff] }
  0x55   :  { %3303 = vmatmul.mubr.msk.f32.gmra.mxu0 %vm278_vm0, %v190_v20  ;;  %v222_v20 = vld [vmem:[%s5341_s1 + $0x248] sm:$0xff] }
  0x56   :  { %3497 = vmatmul.mubr.msk.f32.gmra.mxu1 %vm278_vm0, %v61_v21  ;;  %3305 = vmatprep.mubr.msk.f32.mxu0 %vm278_vm0, %v191_v22  ;;  %v93_v21 = vld [vmem:[%s5342_s0 + $0x248] sm:$0xff]  ;;  %v223_v22 = vld [vmem:[%s5341_s1 + $0x250] sm:$0xff] }
  0x57   :  { %3499 = vmatprep.mubr.msk.f32.mxu1 %vm278_vm0, %v62_v23  ;;  %v94_v23 = vld [vmem:[%s5342_s0 + $0x250] sm:$0xff] }
  0x59   :  { %3306 = vmatmul.mubr.msk.f32.gmra.mxu0 %vm278_vm0, %v192_v24  ;;  %v224_v24 = vld [vmem:[%s5341_s1 + $0x258] sm:$0xff] }
  0x5a   :  { %3500 = vmatmul.mubr.msk.f32.gmra.mxu1 %vm278_vm0, %v63_v25  ;;  %3308 = vmatprep.mubr.msk.f32.mxu0 %vm278_vm0, %v193_v26  ;;  %v95_v25 = vld [vmem:[%s5342_s0 + $0x258] sm:$0xff]  ;;  %v225_v26 = vld [vmem:[%s5341_s1 + $0x260] sm:$0xff] }
  0x5b   :  { %3502 = vmatprep.mubr.msk.f32.mxu1 %vm278_vm0, %v64_v27  ;;  %v96_v27 = vld [vmem:[%s5342_s0 + $0x260] sm:$0xff] }
  0x5d   :  { %3309 = vmatmul.mubr.msk.f32.gmra.mxu0 %vm278_vm0, %v194_v28  ;;  %v226_v28 = vld [vmem:[%s5341_s1 + $0x268] sm:$0xff] }
  0x5e   :  { %3503 = vmatmul.mubr.msk.f32.gmra.mxu1 %vm278_vm0, %v65_v29  ;;  %3311 = vmatprep.mubr.msk.f32.mxu0 %vm278_vm0, %v195_v30  ;;  %v97_v29 = vld [vmem:[%s5342_s0 + $0x268] sm:$0xff]  ;;  %v227_v30 = vld [vmem:[%s5341_s1 + $0x270] sm:$0xff] }
  0x5f   :  { %3505 = vmatprep.mubr.msk.f32.mxu1 %vm278_vm0, %v66_v31  ;;  %v98_v31 = vld [vmem:[%s5342_s0 + $0x270] sm:$0xff] }
  0x61   :  { %3312 = vmatmul.mubr.msk.f32.gmra.mxu0 %vm278_vm0, %v196_v32  ;;  %v228_v32 = vld [vmem:[%s5341_s1 + $0x278] sm:$0xff] }
  0x62   :  { %3506 = vmatmul.mubr.msk.f32.gmra.mxu1 %vm278_vm0, %v67_v33  ;;  %3314 = vmatprep.mubr.msk.f32.mxu0 %vm278_vm0, %v197_v34  ;;  %v99_v33 = vld [vmem:[%s5342_s0 + $0x278] sm:$0xff]  ;;  %v229_v34 = vld [vmem:[%s5341_s1 + $0x280] sm:$0xff] }
  0x63   :  { %3508 = vmatprep.mubr.msk.f32.mxu1 %vm278_vm0, %v68_v35  ;;  %v100_v35 = vld [vmem:[%s5342_s0 + $0x280] sm:$0xff] }
  0x65   :  { %3315 = vmatmul.mubr.msk.f32.gmra.mxu0 %vm278_vm0, %v198_v36  ;;  %v230_v36 = vld [vmem:[%s5341_s1 + $0x288] sm:$0xff] }
  0x66   :  { %3509 = vmatmul.mubr.msk.f32.gmra.mxu1 %vm278_vm0, %v69_v37  ;;  %3317 = vmatprep.mubr.msk.f32.mxu0 %vm278_vm0, %v199_v38  ;;  %v101_v37 = vld [vmem:[%s5342_s0 + $0x288] sm:$0xff]  ;;  %v231_v38 = vld [vmem:[%s5341_s1 + $0x290] sm:$0xff] }
  0x67   :  { %3511 = vmatprep.mubr.msk.f32.mxu1 %vm278_vm0, %v70_v39  ;;  %v102_v39 = vld [vmem:[%s5342_s0 + $0x290] sm:$0xff] }
  0x69   :  { %3318 = vmatmul.mubr.msk.f32.gmra.mxu0 %vm278_vm0, %v200_v40  ;;  %v232_v40 = vld [vmem:[%s5341_s1 + $0x298] sm:$0xff] }
  0x6a   :  { %3512 = vmatmul.mubr.msk.f32.gmra.mxu1 %vm278_vm0, %v71_v41  ;;  %3320 = vmatprep.mubr.msk.f32.mxu0 %vm278_vm0, %v201_v42  ;;  %v103_v41 = vld [vmem:[%s5342_s0 + $0x298] sm:$0xff]  ;;  %v233_v42 = vld [vmem:[%s5341_s1 + $0x2a0] sm:$0xff] }
  0x6b   :  { %3514 = vmatprep.mubr.msk.f32.mxu1 %vm278_vm0, %v72_v43  ;;  %v104_v43 = vld [vmem:[%s5342_s0 + $0x2a0] sm:$0xff] }
  0x6d   :  { %3321 = vmatmul.mubr.msk.f32.gmra.mxu0 %vm278_vm0, %v202_v44  ;;  %v234_v44 = vld [vmem:[%s5341_s1 + $0x2a8] sm:$0xff] }
  0x6e   :  { %3515 = vmatmul.mubr.msk.f32.gmra.mxu1 %vm278_vm0, %v73_v45  ;;  %3323 = vmatprep.mubr.msk.f32.mxu0 %vm278_vm0, %v203_v46  ;;  %v105_v45 = vld [vmem:[%s5342_s0 + $0x2a8] sm:$0xff]  ;;  %v235_v46 = vld [vmem:[%s5341_s1 + $0x2b0] sm:$0xff] }
  0x6f   :  { %3517 = vmatprep.mubr.msk.f32.mxu1 %vm278_vm0, %v74_v47  ;;  %v106_v47 = vld [vmem:[%s5342_s0 + $0x2b0] sm:$0xff] }
  0x71   :  { %3324 = vmatmul.mubr.msk.f32.gmra.mxu0 %vm278_vm0, %v204_v48  ;;  %v236_v48 = vld [vmem:[%s5341_s1 + $0x2b8] sm:$0xff] }
  0x72   :  { %3518 = vmatmul.mubr.msk.f32.gmra.mxu1 %vm278_vm0, %v75_v49  ;;  %3326 = vmatprep.mubr.msk.f32.mxu0 %vm278_vm0, %v205_v50  ;;  %v107_v49 = vld [vmem:[%s5342_s0 + $0x2b8] sm:$0xff]  ;;  %v237_v50 = vld [vmem:[%s5341_s1 + $0x2c0] sm:$0xff] }
  0x73   :  { %3520 = vmatprep.mubr.msk.f32.mxu1 %vm278_vm0, %v76_v51  ;;  %v108_v51 = vld [vmem:[%s5342_s0 + $0x2c0] sm:$0xff] }
  0x75   :  { %3327 = vmatmul.mubr.msk.f32.gmra.mxu0 %vm278_vm0, %v206_v52  ;;  %v238_v52 = vld [vmem:[%s5341_s1 + $0x2c8] sm:$0xff] }
  0x76   :  { %3521 = vmatmul.mubr.msk.f32.gmra.mxu1 %vm278_vm0, %v77_v53  ;;  %3329 = vmatprep.mubr.msk.f32.mxu0 %vm278_vm0, %v207_v54  ;;  %v109_v53 = vld [vmem:[%s5342_s0 + $0x2c8] sm:$0xff]  ;;  %v239_v54 = vld [vmem:[%s5341_s1 + $0x2d0] sm:$0xff] }
  0x77   :  { %3523 = vmatprep.mubr.msk.f32.mxu1 %vm278_vm0, %v78_v55  ;;  %v110_v55 = vld [vmem:[%s5342_s0 + $0x2d0] sm:$0xff] }
  0x79   :  { %3330 = vmatmul.mubr.msk.f32.gmra.mxu0 %vm278_vm0, %v208_v56  ;;  %v240_v56 = vld [vmem:[%s5341_s1 + $0x2d8] sm:$0xff] }
  0x7a   :  { %3524 = vmatmul.mubr.msk.f32.gmra.mxu1 %vm278_vm0, %v79_v57  ;;  %3332 = vmatprep.mubr.msk.f32.mxu0 %vm278_vm0, %v209_v58  ;;  %v111_v57 = vld [vmem:[%s5342_s0 + $0x2d8] sm:$0xff]  ;;  %v241_v58 = vld [vmem:[%s5341_s1 + $0x2e0] sm:$0xff] }
  0x7b   :  { %3526 = vmatprep.mubr.msk.f32.mxu1 %vm278_vm0, %v80_v59  ;;  %v112_v59 = vld [vmem:[%s5342_s0 + $0x2e0] sm:$0xff] }
  0x7d   :  { %3333 = vmatmul.mubr.msk.f32.gmra.mxu0 %vm278_vm0, %v210_v60  ;;  %v242_v60 = vld [vmem:[%s5341_s1 + $0x2e8] sm:$0xff] }
  0x7e   :  { %3527 = vmatmul.mubr.msk.f32.gmra.mxu1 %vm278_vm0, %v81_v61  ;;  %3335 = vmatprep.mubr.msk.f32.mxu0 %vm278_vm0, %v211_v62  ;;  %v113_v61 = vld [vmem:[%s5342_s0 + $0x2e8] sm:$0xff]  ;;  %v243_v62 = vld [vmem:[%s5341_s1 + $0x2f0] sm:$0xff] }
  0x7f   :  { %3529 = vmatprep.mubr.msk.f32.mxu1 %vm278_vm0, %v82_v63  ;;  %v114_v63 = vld [vmem:[%s5342_s0 + $0x2f0] sm:$0xff] }
  0x81   :  { %3336 = vmatmul.mubr.msk.f32.gmra.mxu0 %vm278_vm0, %v212_v0  ;;  %v244_v0 = vld [vmem:[%s5341_s1 + $0x2f8] sm:$0xff] }
  0x82   :  { %3530 = vmatmul.mubr.msk.f32.gmra.mxu1 %vm278_vm0, %v83_v1  ;;  %3338 = vmatprep.mubr.msk.f32.mxu0 %vm278_vm0, %v213_v2  ;;  %v115_v1 = vld [vmem:[%s5342_s0 + $0x2f8] sm:$0xff]  ;;  %v245_v2 = vld [vmem:[%s5341_s1 + $0x300] sm:$0xff] }
  0x83   :  { %3532 = vmatprep.mubr.msk.f32.mxu1 %vm278_vm0, %v84_v3  ;;  %v116_v3 = vld [vmem:[%s5342_s0 + $0x300] sm:$0xff] }
  0x85   :  { %3339 = vmatmul.mubr.msk.f32.gmra.mxu0 %vm278_vm0, %v214_v4  ;;  %v246_v4 = vld [vmem:[%s5341_s1 + $0x308] sm:$0xff] }
  0x86   :  { %3533 = vmatmul.mubr.msk.f32.gmra.mxu1 %vm278_vm0, %v85_v5  ;;  %3341 = vmatprep.mubr.msk.f32.mxu0 %vm278_vm0, %v215_v6  ;;  %v117_v5 = vld [vmem:[%s5342_s0 + $0x308] sm:$0xff]  ;;  %v247_v6 = vld [vmem:[%s5341_s1 + $0x310] sm:$0xff] }
  0x87   :  { %3535 = vmatprep.mubr.msk.f32.mxu1 %vm278_vm0, %v86_v7  ;;  %v118_v7 = vld [vmem:[%s5342_s0 + $0x310] sm:$0xff] }
  0x89   :  { %3342 = vmatmul.mubr.msk.f32.gmra.mxu0 %vm278_vm0, %v216_v8 }
  0x8a   :  { %3536 = vmatmul.mubr.msk.f32.gmra.mxu1 %vm278_vm0, %v87_v9  ;;  %3344 = vmatprep.mubr.msk.f32.mxu0 %vm278_vm0, %v217_v10  ;;  %v4457_v10 = vld [vmem:[%s5343_s4] ss:$0 sm:$0xff] }
  0x8b   :  { %3538 = vmatprep.mubr.msk.f32.mxu1 %vm278_vm0, %v88_v11 }
  0x8d   :  { %3345 = vmatmul.mubr.msk.f32.gmra.mxu0 %vm278_vm0, %v218_v12  ;;  %v248_v12 = vld [vmem:[%s5341_s1 + $0x318] sm:$0xff] }
  0x8e   :  { %3539 = vmatmul.mubr.msk.f32.gmra.mxu1 %vm278_vm0, %v89_v13  ;;  %3347 = vmatprep.mubr.msk.f32.mxu0 %vm278_vm0, %v219_v14  ;;  %v119_v13 = vld [vmem:[%s5342_s0 + $0x318] sm:$0xff] }
  0x8f   :  { %3541 = vmatprep.mubr.msk.f32.mxu1 %vm278_vm0, %v90_v15 }
  0x91   :  { %3348 = vmatmul.mubr.msk.f32.gmra.mxu0 %vm278_vm0, %v220_v16  ;;  %v249_v16 = vld [vmem:[%s5341_s1 + $0x320] sm:$0xff] }
  0x92   :  { %3542 = vmatmul.mubr.msk.f32.gmra.mxu1 %vm278_vm0, %v91_v17  ;;  %3350 = vmatprep.mubr.msk.f32.mxu0 %vm278_vm0, %v221_v18  ;;  %v120_v17 = vld [vmem:[%s5342_s0 + $0x320] sm:$0xff] }
  0x93   :  { %3544 = vmatprep.mubr.msk.f32.mxu1 %vm278_vm0, %v92_v19 }
  0x95   :  { %3351 = vmatmul.mubr.msk.f32.gmra.mxu0 %vm278_vm0, %v222_v20 }
  0x96   :  { %3545 = vmatmul.mubr.msk.f32.gmra.mxu1 %vm278_vm0, %v93_v21  ;;  %3353 = vmatprep.mubr.msk.f32.mxu0 %vm278_vm0, %v223_v22 }
  0x97   :  { %3547 = vmatprep.mubr.msk.f32.mxu1 %vm278_vm0, %v94_v23 }
  0x99   :  { %3354 = vmatmul.mubr.msk.f32.gmra.mxu0 %vm278_vm0, %v224_v24  ;;  %v250_v24 = vld [vmem:[%s5341_s1 + $0x328] sm:$0xff] }
  0x9a   :  { %3548 = vmatmul.mubr.msk.f32.gmra.mxu1 %vm278_vm0, %v95_v25  ;;  %3356 = vmatprep.mubr.msk.f32.mxu0 %vm278_vm0, %v225_v26  ;;  %v121_v25 = vld [vmem:[%s5342_s0 + $0x328] sm:$0xff] }
  0x9b   :  { %3550 = vmatprep.mubr.msk.f32.mxu1 %vm278_vm0, %v96_v27 }
  0x9d   :  { %3357 = vmatmul.mubr.msk.f32.gmra.mxu0 %vm278_vm0, %v226_v28  ;;  %v251_v28 = vld [vmem:[%s5341_s1 + $0x330] sm:$0xff] }
  0x9e   :  { %3551 = vmatmul.mubr.msk.f32.gmra.mxu1 %vm278_vm0, %v97_v29  ;;  %3359 = vmatprep.mubr.msk.f32.mxu0 %vm278_vm0, %v227_v30  ;;  %v122_v29 = vld [vmem:[%s5342_s0 + $0x330] sm:$0xff] }
  0x9f   :  { %3553 = vmatprep.mubr.msk.f32.mxu1 %vm278_vm0, %v98_v31 }
  0xa1   :  { %3360 = vmatmul.mubr.msk.f32.gmra.mxu0 %vm278_vm0, %v228_v32 }
  0xa2   :  { %3554 = vmatmul.mubr.msk.f32.gmra.mxu1 %vm278_vm0, %v99_v33  ;;  %3362 = vmatprep.mubr.msk.f32.mxu0 %vm278_vm0, %v229_v34 }
  0xa3   :  { %3556 = vmatprep.mubr.msk.f32.mxu1 %vm278_vm0, %v100_v35 }
  0xa5   :  { %3363 = vmatmul.mubr.msk.f32.gmra.mxu0 %vm278_vm0, %v230_v36  ;;  %v252_v36 = vld [vmem:[%s5341_s1 + $0x338] sm:$0xff] }
  0xa6   :  { %3557 = vmatmul.mubr.msk.f32.gmra.mxu1 %vm278_vm0, %v101_v37  ;;  %3365 = vmatprep.mubr.msk.f32.mxu0 %vm278_vm0, %v231_v38  ;;  %v123_v37 = vld [vmem:[%s5342_s0 + $0x338] sm:$0xff] }
  0xa7   :  { %3559 = vmatprep.mubr.msk.f32.mxu1 %vm278_vm0, %v102_v39 }
  0xa9   :  { %3366 = vmatmul.mubr.msk.f32.gmra.mxu0 %vm278_vm0, %v232_v40  ;;  %v253_v40 = vld [vmem:[%s5341_s1 + $0x340] sm:$0xff] }
  0xaa   :  { %3560 = vmatmul.mubr.msk.f32.gmra.mxu1 %vm278_vm0, %v103_v41  ;;  %3368 = vmatprep.mubr.msk.f32.mxu0 %vm278_vm0, %v233_v42  ;;  %v124_v41 = vld [vmem:[%s5342_s0 + $0x340] sm:$0xff] }
  0xab   :  { %3562 = vmatprep.mubr.msk.f32.mxu1 %vm278_vm0, %v104_v43 }
  0xad   :  { %3369 = vmatmul.mubr.msk.f32.gmra.mxu0 %vm278_vm0, %v234_v44 }
  0xae   :  { %3563 = vmatmul.mubr.msk.f32.gmra.mxu1 %vm278_vm0, %v105_v45  ;;  %3371 = vmatprep.mubr.msk.f32.mxu0 %vm278_vm0, %v235_v46 }
  0xaf   :  { %3565 = vmatprep.mubr.msk.f32.mxu1 %vm278_vm0, %v106_v47 }
  0xb1   :  { %3372 = vmatmul.mubr.msk.f32.gmra.mxu0 %vm278_vm0, %v236_v48  ;;  %v254_v48 = vld [vmem:[%s5341_s1 + $0x348] sm:$0xff] }
  0xb2   :  { %3566 = vmatmul.mubr.msk.f32.gmra.mxu1 %vm278_vm0, %v107_v49  ;;  %3374 = vmatprep.mubr.msk.f32.mxu0 %vm278_vm0, %v237_v50  ;;  %v125_v49 = vld [vmem:[%s5342_s0 + $0x348] sm:$0xff] }
  0xb3   :  { %3568 = vmatprep.mubr.msk.f32.mxu1 %vm278_vm0, %v108_v51 }
  0xb5   :  { %3375 = vmatmul.mubr.msk.f32.gmra.mxu0 %vm278_vm0, %v238_v52  ;;  %v255_v52 = vld [vmem:[%s5341_s1 + $0x350] sm:$0xff] }
  0xb6   :  { %3569 = vmatmul.mubr.msk.f32.gmra.mxu1 %vm278_vm0, %v109_v53  ;;  %3377 = vmatprep.mubr.msk.f32.mxu0 %vm278_vm0, %v239_v54  ;;  %v126_v53 = vld [vmem:[%s5342_s0 + $0x350] sm:$0xff] }
  0xb7   :  { %3571 = vmatprep.mubr.msk.f32.mxu1 %vm278_vm0, %v110_v55 }
  0xb9   :  { %3378 = vmatmul.mubr.msk.f32.gmra.mxu0 %vm278_vm0, %v240_v56 }
  0xba   :  { %3572 = vmatmul.mubr.msk.f32.gmra.mxu1 %vm278_vm0, %v111_v57  ;;  %3380 = vmatprep.mubr.msk.f32.mxu0 %vm278_vm0, %v241_v58 }
  0xbb   :  { %3574 = vmatprep.mubr.msk.f32.mxu1 %vm278_vm0, %v112_v59 }
  0xbd   :  { %3381 = vmatmul.mubr.msk.f32.gmra.mxu0 %vm278_vm0, %v242_v60  ;;  %v256_v60 = vld [vmem:[%s5341_s1 + $0x358] sm:$0xff] }
  0xbe   :  { %3575 = vmatmul.mubr.msk.f32.gmra.mxu1 %vm278_vm0, %v113_v61  ;;  %3383 = vmatprep.mubr.msk.f32.mxu0 %vm278_vm0, %v243_v62  ;;  %v127_v61 = vld [vmem:[%s5342_s0 + $0x358] sm:$0xff] }
  0xbf   :  { %3577 = vmatprep.mubr.msk.f32.mxu1 %vm278_vm0, %v114_v63 }
  0xc1   :  { %3384 = vmatmul.mubr.msk.f32.gmra.mxu0 %vm278_vm0, %v244_v0  ;;  %v257_v0 = vld [vmem:[%s5341_s1 + $0x360] sm:$0xff] }
  0xc2   :  { %3578 = vmatmul.mubr.msk.f32.gmra.mxu1 %vm278_vm0, %v115_v1  ;;  %3386 = vmatprep.mubr.msk.f32.mxu0 %vm278_vm0, %v245_v2  ;;  %v128_v1 = vld [vmem:[%s5342_s0 + $0x360] sm:$0xff] }
  0xc3   :  { %3580 = vmatprep.mubr.msk.f32.mxu1 %vm278_vm0, %v116_v3 }
  0xc5   :  { %v3244_v8 = vpop.f32.mrf.mxu0  ;;  %3387 = vmatmul.mubr.msk.f32.gmra.mxu0 %vm278_vm0, %v246_v4 }
  0xc6   :  { %v3438_v9 = vpop.f32.mrf.mxu1  ;;  %3581 = vmatmul.mubr.msk.f32.gmra.mxu1 %vm278_vm0, %v117_v5  ;;  %3389 = vmatprep.mubr.msk.f32.mxu0 %vm278_vm0, %v247_v6 }
  0xc7   :  { %v1824_v11 = vadd.f32 %v3438_v9, %v3244_v8  ;;  %3583 = vmatprep.mubr.msk.f32.mxu1 %vm278_vm0, %v118_v7  ;;  %v729_v14 = vpop.f32.mrf.mxu0  ;;  %v258_v8 = vld [vmem:[%s5341_s1 + $0x368] sm:$0xff] }
  0xc8   :  { %v1818_v15 = vpop.f32.mrf.mxu1  ;;  %v129_v9 = vld [vmem:[%s5342_s0 + $0x368] sm:$0xff] }
  0xc9   :  { %v2465_v18 = vadd.f32 %v4457_v10, %v1824_v11  ;;  %v1819_v19 = vadd.f32 %v1818_v15, %v729_v14  ;;  %v3247_v20 = vpop.f32.mrf.mxu0  ;;  %3390 = vmatmul.mubr.msk.f32.gmra.mxu0 %vm278_vm0, %v248_v12  ;;  %v130_v14 = vld [vmem:[%s5342_s0 + $0x370] sm:$0xff] }
  0xca   :  { %v3441_v21 = vpop.f32.mrf.mxu1  ;;  %3584 = vmatmul.mubr.msk.f32.gmra.mxu1 %vm278_vm0, %v119_v13  ;;  %3392 = vmatprep.mubr.msk.f32.mxu0 %vm278_vm0, %v249_v16  ;;  %v259_v13 = vld [vmem:[%s5341_s1 + $0x370] sm:$0xff] }
  0xcb   :  { %2594 = vst.msk [vmem:[%s5344_s5 + $0x8] sm:$0xff] %vm2592_vm1, %v2465_v18  ;;  %v2464_v22 = vadd.f32 %v4457_v10, %v1819_v19  ;;  %v1834_v23 = vadd.f32 %v3441_v21, %v3247_v20  ;;  %3586 = vmatprep.mubr.msk.f32.mxu1 %vm278_vm0, %v120_v17  ;;  %v739_v26 = vpop.f32.mrf.mxu0  ;;  %v260_v21 = vld [vmem:[%s5341_s1 + $0x378] sm:$0xff] }
  0xcc   :  { %v1828_v27 = vpop.f32.mrf.mxu1 }
  0xcd   :  { %2593 = vst.msk [vmem:[%s5344_s5] sm:$0xff] %vm2592_vm1, %v2464_v22  ;;  %v2467_v30 = vadd.f32 %v4457_v10, %v1834_v23  ;;  %v1829_v31 = vadd.f32 %v1828_v27, %v739_v26  ;;  %v3250_v32 = vpop.f32.mrf.mxu0  ;;  %3393 = vmatmul.mubr.msk.f32.gmra.mxu0 %vm278_vm0, %v250_v24  ;;  %v131_v22 = vld [vmem:[%s5342_s0 + $0x378] sm:$0xff]  ;;  %v132_v26 = vld [vmem:[%s5342_s0 + $0x380] sm:$0xff] }
  0xce   :  { %v3444_v33 = vpop.f32.mrf.mxu1  ;;  %3587 = vmatmul.mubr.msk.f32.gmra.mxu1 %vm278_vm0, %v121_v25  ;;  %3395 = vmatprep.mubr.msk.f32.mxu0 %vm278_vm0, %v251_v28  ;;  %v261_v25 = vld [vmem:[%s5341_s1 + $0x380] sm:$0xff] }
  0xcf   :  { %2596 = vst.msk [vmem:[%s5344_s5 + $0x18] sm:$0xff] %vm2592_vm1, %v2467_v30  ;;  %v2466_v34 = vadd.f32 %v4457_v10, %v1829_v31  ;;  %v1844_v35 = vadd.f32 %v3444_v33, %v3250_v32  ;;  %3589 = vmatprep.mubr.msk.f32.mxu1 %vm278_vm0, %v122_v29  ;;  %v749_v38 = vpop.f32.mrf.mxu0  ;;  %v262_v33 = vld [vmem:[%s5341_s1 + $0x388] sm:$0xff] }
  0xd0   :  { %v1838_v39 = vpop.f32.mrf.mxu1 }
  0xd1   :  { %2595 = vst.msk [vmem:[%s5344_s5 + $0x10] sm:$0xff] %vm2592_vm1, %v2466_v34  ;;  %v2469_v42 = vadd.f32 %v4457_v10, %v1844_v35  ;;  %v1839_v43 = vadd.f32 %v1838_v39, %v749_v38  ;;  %v3253_v44 = vpop.f32.mrf.mxu0  ;;  %3396 = vmatmul.mubr.msk.f32.gmra.mxu0 %vm278_vm0, %v252_v36  ;;  %v133_v34 = vld [vmem:[%s5342_s0 + $0x388] sm:$0xff]  ;;  %v134_v38 = vld [vmem:[%s5342_s0 + $0x390] sm:$0xff] }
  0xd2   :  { %v3447_v45 = vpop.f32.mrf.mxu1  ;;  %3590 = vmatmul.mubr.msk.f32.gmra.mxu1 %vm278_vm0, %v123_v37  ;;  %3398 = vmatprep.mubr.msk.f32.mxu0 %vm278_vm0, %v253_v40  ;;  %v263_v37 = vld [vmem:[%s5341_s1 + $0x390] sm:$0xff] }
  0xd3   :  { %2598 = vst.msk [vmem:[%s5344_s5 + $0x28] sm:$0xff] %vm2592_vm1, %v2469_v42  ;;  %v2468_v46 = vadd.f32 %v4457_v10, %v1839_v43  ;;  %v1854_v47 = vadd.f32 %v3447_v45, %v3253_v44  ;;  %3592 = vmatprep.mubr.msk.f32.mxu1 %vm278_vm0, %v124_v41  ;;  %v759_v50 = vpop.f32.mrf.mxu0  ;;  %v264_v45 = vld [vmem:[%s5341_s1 + $0x398] sm:$0xff] }
  0xd4   :  { %v1848_v51 = vpop.f32.mrf.mxu1 }
  0xd5   :  { %2597 = vst.msk [vmem:[%s5344_s5 + $0x20] sm:$0xff] %vm2592_vm1, %v2468_v46  ;;  %v2471_v54 = vadd.f32 %v4457_v10, %v1854_v47  ;;  %v1849_v55 = vadd.f32 %v1848_v51, %v759_v50  ;;  %v3256_v56 = vpop.f32.mrf.mxu0  ;;  %3399 = vmatmul.mubr.msk.f32.gmra.mxu0 %vm278_vm0, %v254_v48  ;;  %v135_v46 = vld [vmem:[%s5342_s0 + $0x398] sm:$0xff]  ;;  %v136_v50 = vld [vmem:[%s5342_s0 + $0x3a0] sm:$0xff] }
  0xd6   :  { %v3450_v57 = vpop.f32.mrf.mxu1  ;;  %3593 = vmatmul.mubr.msk.f32.gmra.mxu1 %vm278_vm0, %v125_v49  ;;  %3401 = vmatprep.mubr.msk.f32.mxu0 %vm278_vm0, %v255_v52  ;;  %v265_v49 = vld [vmem:[%s5341_s1 + $0x3a0] sm:$0xff] }
  0xd7   :  { %2600 = vst.msk [vmem:[%s5344_s5 + $0x38] sm:$0xff] %vm2592_vm1, %v2471_v54  ;;  %v2470_v58 = vadd.f32 %v4457_v10, %v1849_v55  ;;  %v1864_v59 = vadd.f32 %v3450_v57, %v3256_v56  ;;  %3595 = vmatprep.mubr.msk.f32.mxu1 %vm278_vm0, %v126_v53  ;;  %v769_v62 = vpop.f32.mrf.mxu0  ;;  %v266_v57 = vld [vmem:[%s5341_s1 + $0x3a8] sm:$0xff] }
  0xd8   :  { %v1858_v63 = vpop.f32.mrf.mxu1 }
  0xd9   :  { %2599 = vst.msk [vmem:[%s5344_s5 + $0x30] sm:$0xff] %vm2592_vm1, %v2470_v58  ;;  %v2473_v2 = vadd.f32 %v4457_v10, %v1864_v59  ;;  %v1859_v3 = vadd.f32 %v1858_v63, %v769_v62  ;;  %v3259_v4 = vpop.f32.mrf.mxu0  ;;  %3402 = vmatmul.mubr.msk.f32.gmra.mxu0 %vm278_vm0, %v256_v60  ;;  %v137_v58 = vld [vmem:[%s5342_s0 + $0x3a8] sm:$0xff]  ;;  %v138_v62 = vld [vmem:[%s5342_s0 + $0x3b0] sm:$0xff] }
  0xda   :  { %v3453_v5 = vpop.f32.mrf.mxu1  ;;  %3596 = vmatmul.mubr.msk.f32.gmra.mxu1 %vm278_vm0, %v127_v61  ;;  %3404 = vmatprep.mubr.msk.f32.mxu0 %vm278_vm0, %v257_v0  ;;  %v267_v61 = vld [vmem:[%s5341_s1 + $0x3b0] sm:$0xff] }
  0xdb   :  { %2602 = vst.msk [vmem:[%s5344_s5 + $0x48] sm:$0xff] %vm2592_vm1, %v2473_v2  ;;  %v2472_v6 = vadd.f32 %v4457_v10, %v1859_v3  ;;  %v1874_v7 = vadd.f32 %v3453_v5, %v3259_v4  ;;  %3598 = vmatprep.mubr.msk.f32.mxu1 %vm278_vm0, %v128_v1  ;;  %v779_v11 = vpop.f32.mrf.mxu0  ;;  %v268_v5 = vld [vmem:[%s5341_s1 + $0x3b8] sm:$0xff] }
  0xdc   :  { %v1868_v12 = vpop.f32.mrf.mxu1 }
  0xdd   :  { %2601 = vst.msk [vmem:[%s5344_s5 + $0x40] sm:$0xff] %vm2592_vm1, %v2472_v6  ;;  %v2475_v15 = vadd.f32 %v4457_v10, %v1874_v7  ;;  %v1869_v16 = vadd.f32 %v1868_v12, %v779_v11  ;;  %v3262_v17 = vpop.f32.mrf.mxu0  ;;  %3405 = vmatmul.mubr.msk.f32.gmra.mxu0 %vm278_vm0, %v258_v8  ;;  %v139_v6 = vld [vmem:[%s5342_s0 + $0x3b8] sm:$0xff]  ;;  %v140_v11 = vld [vmem:[%s5342_s0 + $0x3c0] sm:$0xff] }
  0xde   :  { %v3456_v18 = vpop.f32.mrf.mxu1  ;;  %3599 = vmatmul.mubr.msk.f32.gmra.mxu1 %vm278_vm0, %v129_v9  ;;  %3407 = vmatprep.mubr.msk.f32.mxu0 %vm278_vm0, %v259_v13  ;;  %v269_v9 = vld [vmem:[%s5341_s1 + $0x3c0] sm:$0xff] }
  0xdf   :  { %2604 = vst.msk [vmem:[%s5344_s5 + $0x58] sm:$0xff] %vm2592_vm1, %v2475_v15  ;;  %v2474_v19 = vadd.f32 %v4457_v10, %v1869_v16  ;;  %v1884_v20 = vadd.f32 %v3456_v18, %v3262_v17  ;;  %3601 = vmatprep.mubr.msk.f32.mxu1 %vm278_vm0, %v130_v14  ;;  %v789_v23 = vpop.f32.mrf.mxu0  ;;  %v270_v18 = vld [vmem:[%s5341_s1 + $0x3c8] sm:$0xff] }
  0xe0   :  { %v1878_v24 = vpop.f32.mrf.mxu1 }
  0xe1   :  { %2603 = vst.msk [vmem:[%s5344_s5 + $0x50] sm:$0xff] %vm2592_vm1, %v2474_v19  ;;  %v2477_v27 = vadd.f32 %v4457_v10, %v1884_v20  ;;  %v1879_v28 = vadd.f32 %v1878_v24, %v789_v23  ;;  %v3265_v29 = vpop.f32.mrf.mxu0  ;;  %3408 = vmatmul.mubr.msk.f32.gmra.mxu0 %vm278_vm0, %v260_v21  ;;  %v141_v19 = vld [vmem:[%s5342_s0 + $0x3c8] sm:$0xff]  ;;  %v142_v23 = vld [vmem:[%s5342_s0 + $0x3d0] sm:$0xff] }
  0xe2   :  { %v3459_v30 = vpop.f32.mrf.mxu1  ;;  %3602 = vmatmul.mubr.msk.f32.gmra.mxu1 %vm278_vm0, %v131_v22  ;;  %3410 = vmatprep.mubr.msk.f32.mxu0 %vm278_vm0, %v261_v25  ;;  %v271_v22 = vld [vmem:[%s5341_s1 + $0x3d0] sm:$0xff] }
  0xe3   :  { %2606 = vst.msk [vmem:[%s5344_s5 + $0x68] sm:$0xff] %vm2592_vm1, %v2477_v27  ;;  %v2476_v31 = vadd.f32 %v4457_v10, %v1879_v28  ;;  %v1894_v32 = vadd.f32 %v3459_v30, %v3265_v29  ;;  %3604 = vmatprep.mubr.msk.f32.mxu1 %vm278_vm0, %v132_v26  ;;  %v799_v35 = vpop.f32.mrf.mxu0  ;;  %v272_v30 = vld [vmem:[%s5341_s1 + $0x3d8] sm:$0xff] }
  0xe4   :  { %v1888_v36 = vpop.f32.mrf.mxu1 }
  0xe5   :  { %2605 = vst.msk [vmem:[%s5344_s5 + $0x60] sm:$0xff] %vm2592_vm1, %v2476_v31  ;;  %v2479_v39 = vadd.f32 %v4457_v10, %v1894_v32  ;;  %v1889_v40 = vadd.f32 %v1888_v36, %v799_v35  ;;  %v3268_v41 = vpop.f32.mrf.mxu0  ;;  %3411 = vmatmul.mubr.msk.f32.gmra.mxu0 %vm278_vm0, %v262_v33  ;;  %v143_v31 = vld [vmem:[%s5342_s0 + $0x3d8] sm:$0xff]  ;;  %v144_v35 = vld [vmem:[%s5342_s0 + $0x3e0] sm:$0xff] }
  0xe6   :  { %v3462_v42 = vpop.f32.mrf.mxu1  ;;  %3605 = vmatmul.mubr.msk.f32.gmra.mxu1 %vm278_vm0, %v133_v34  ;;  %3413 = vmatprep.mubr.msk.f32.mxu0 %vm278_vm0, %v263_v37  ;;  %v273_v34 = vld [vmem:[%s5341_s1 + $0x3e0] sm:$0xff] }
  0xe7   :  { %2608 = vst.msk [vmem:[%s5344_s5 + $0x78] sm:$0xff] %vm2592_vm1, %v2479_v39  ;;  %v2478_v43 = vadd.f32 %v4457_v10, %v1889_v40  ;;  %v1904_v44 = vadd.f32 %v3462_v42, %v3268_v41  ;;  %3607 = vmatprep.mubr.msk.f32.mxu1 %vm278_vm0, %v134_v38  ;;  %v809_v47 = vpop.f32.mrf.mxu0  ;;  %v274_v42 = vld [vmem:[%s5341_s1 + $0x3e8] sm:$0xff] }
  0xe8   :  { %v1898_v48 = vpop.f32.mrf.mxu1 }
  0xe9   :  { %2607 = vst.msk [vmem:[%s5344_s5 + $0x70] sm:$0xff] %vm2592_vm1, %v2478_v43  ;;  %v2481_v51 = vadd.f32 %v4457_v10, %v1904_v44  ;;  %v1899_v52 = vadd.f32 %v1898_v48, %v809_v47  ;;  %v3271_v53 = vpop.f32.mrf.mxu0  ;;  %3414 = vmatmul.mubr.msk.f32.gmra.mxu0 %vm278_vm0, %v264_v45  ;;  %v145_v43 = vld [vmem:[%s5342_s0 + $0x3e8] sm:$0xff]  ;;  %v146_v47 = vld [vmem:[%s5342_s0 + $0x3f0] sm:$0xff] }
  0xea   :  { %v3465_v54 = vpop.f32.mrf.mxu1  ;;  %3608 = vmatmul.mubr.msk.f32.gmra.mxu1 %vm278_vm0, %v135_v46  ;;  %3416 = vmatprep.mubr.msk.f32.mxu0 %vm278_vm0, %v265_v49  ;;  %v275_v46 = vld [vmem:[%s5341_s1 + $0x3f0] sm:$0xff] }
  0xeb   :  { %2610 = vst.msk [vmem:[%s5344_s5 + $0x88] sm:$0xff] %vm2592_vm1, %v2481_v51  ;;  %v2480_v55 = vadd.f32 %v4457_v10, %v1899_v52  ;;  %v1914_v56 = vadd.f32 %v3465_v54, %v3271_v53  ;;  %3610 = vmatprep.mubr.msk.f32.mxu1 %vm278_vm0, %v136_v50  ;;  %v819_v59 = vpop.f32.mrf.mxu0  ;;  %v276_v54 = vld [vmem:[%s5341_s1 + $0x3f8] sm:$0xff] }
  0xec   :  { %v1908_v60 = vpop.f32.mrf.mxu1 }
  0xed   :  { %2609 = vst.msk [vmem:[%s5344_s5 + $0x80] sm:$0xff] %vm2592_vm1, %v2480_v55  ;;  %v2483_v63 = vadd.f32 %v4457_v10, %v1914_v56  ;;  %v1909_v0 = vadd.f32 %v1908_v60, %v819_v59  ;;  %v3274_v1 = vpop.f32.mrf.mxu0  ;;  %3417 = vmatmul.mubr.msk.f32.gmra.mxu0 %vm278_vm0, %v266_v57  ;;  %v147_v55 = vld [vmem:[%s5342_s0 + $0x3f8] sm:$0xff] }
  0xee   :  { %v3468_v2 = vpop.f32.mrf.mxu1  ;;  %3611 = vmatmul.mubr.msk.f32.gmra.mxu1 %vm278_vm0, %v137_v58  ;;  %3419 = vmatprep.mubr.msk.f32.mxu0 %vm278_vm0, %v267_v61 }
  0xef   :  { %2612 = vst.msk [vmem:[%s5344_s5 + $0x98] sm:$0xff] %vm2592_vm1, %v2483_v63  ;;  %v2482_v3 = vadd.f32 %v4457_v10, %v1909_v0  ;;  %v1924_v4 = vadd.f32 %v3468_v2, %v3274_v1  ;;  %3613 = vmatprep.mubr.msk.f32.mxu1 %vm278_vm0, %v138_v62  ;;  %v829_v7 = vpop.f32.mrf.mxu0 }
  0xf0   :  { %v1918_v8 = vpop.f32.mrf.mxu1 }
  0xf1   :  { %2611 = vst.msk [vmem:[%s5344_s5 + $0x90] sm:$0xff] %vm2592_vm1, %v2482_v3  ;;  %v2485_v12 = vadd.f32 %v4457_v10, %v1924_v4  ;;  %v1919_v13 = vadd.f32 %v1918_v8, %v829_v7  ;;  %v3277_v14 = vpop.f32.mrf.mxu0  ;;  %3420 = vmatmul.mubr.msk.f32.gmra.mxu0 %vm278_vm0, %v268_v5 }
  0xf2   :  { %v3471_v15 = vpop.f32.mrf.mxu1  ;;  %3614 = vmatmul.mubr.msk.f32.gmra.mxu1 %vm278_vm0, %v139_v6  ;;  %3422 = vmatprep.mubr.msk.f32.mxu0 %vm278_vm0, %v269_v9 }
  0xf3   :  { %2614 = vst.msk [vmem:[%s5344_s5 + $0xa8] sm:$0xff] %vm2592_vm1, %v2485_v12  ;;  %v2484_v16 = vadd.f32 %v4457_v10, %v1919_v13  ;;  %v1934_v17 = vadd.f32 %v3471_v15, %v3277_v14  ;;  %3616 = vmatprep.mubr.msk.f32.mxu1 %vm278_vm0, %v140_v11  ;;  %v839_v20 = vpop.f32.mrf.mxu0 }
  0xf4   :  { %v1928_v21 = vpop.f32.mrf.mxu1 }
  0xf5   :  { %2613 = vst.msk [vmem:[%s5344_s5 + $0xa0] sm:$0xff] %vm2592_vm1, %v2484_v16  ;;  %v2487_v24 = vadd.f32 %v4457_v10, %v1934_v17  ;;  %v1929_v25 = vadd.f32 %v1928_v21, %v839_v20  ;;  %v3280_v26 = vpop.f32.mrf.mxu0  ;;  %3423 = vmatmul.mubr.msk.f32.gmra.mxu0 %vm278_vm0, %v270_v18 }
  0xf6   :  { %v3474_v27 = vpop.f32.mrf.mxu1  ;;  %3617 = vmatmul.mubr.msk.f32.gmra.mxu1 %vm278_vm0, %v141_v19  ;;  %3425 = vmatprep.mubr.msk.f32.mxu0 %vm278_vm0, %v271_v22 }
  0xf7   :  { %2616 = vst.msk [vmem:[%s5344_s5 + $0xb8] sm:$0xff] %vm2592_vm1, %v2487_v24  ;;  %v2486_v28 = vadd.f32 %v4457_v10, %v1929_v25  ;;  %v1944_v29 = vadd.f32 %v3474_v27, %v3280_v26  ;;  %3619 = vmatprep.mubr.msk.f32.mxu1 %vm278_vm0, %v142_v23  ;;  %v849_v32 = vpop.f32.mrf.mxu0 }
  0xf8   :  { %v1938_v33 = vpop.f32.mrf.mxu1 }
  0xf9   :  { %2615 = vst.msk [vmem:[%s5344_s5 + $0xb0] sm:$0xff] %vm2592_vm1, %v2486_v28  ;;  %v2489_v36 = vadd.f32 %v4457_v10, %v1944_v29  ;;  %v1939_v37 = vadd.f32 %v1938_v33, %v849_v32  ;;  %v3283_v38 = vpop.f32.mrf.mxu0  ;;  %3426 = vmatmul.mubr.msk.f32.gmra.mxu0 %vm278_vm0, %v272_v30 }
  0xfa   :  { %v3477_v39 = vpop.f32.mrf.mxu1  ;;  %3620 = vmatmul.mubr.msk.f32.gmra.mxu1 %vm278_vm0, %v143_v31  ;;  %3428 = vmatprep.mubr.msk.f32.mxu0 %vm278_vm0, %v273_v34 }
  0xfb   :  { %2618 = vst.msk [vmem:[%s5344_s5 + $0xc8] sm:$0xff] %vm2592_vm1, %v2489_v36  ;;  %v2488_v40 = vadd.f32 %v4457_v10, %v1939_v37  ;;  %v1954_v41 = vadd.f32 %v3477_v39, %v3283_v38  ;;  %3622 = vmatprep.mubr.msk.f32.mxu1 %vm278_vm0, %v144_v35  ;;  %v859_v44 = vpop.f32.mrf.mxu0 }
  0xfc   :  { %v1948_v45 = vpop.f32.mrf.mxu1 }
  0xfd   :  { %2617 = vst.msk [vmem:[%s5344_s5 + $0xc0] sm:$0xff] %vm2592_vm1, %v2488_v40  ;;  %v2491_v48 = vadd.f32 %v4457_v10, %v1954_v41  ;;  %v1949_v49 = vadd.f32 %v1948_v45, %v859_v44  ;;  %v3286_v50 = vpop.f32.mrf.mxu0  ;;  %3429 = vmatmul.mubr.msk.f32.gmra.mxu0 %vm278_vm0, %v274_v42 }
  0xfe   :  { %v3480_v51 = vpop.f32.mrf.mxu1  ;;  %3623 = vmatmul.mubr.msk.f32.gmra.mxu1 %vm278_vm0, %v145_v43  ;;  %3431 = vmatprep.mubr.msk.f32.mxu0 %vm278_vm0, %v275_v46 }
  0xff   :  { %2620 = vst.msk [vmem:[%s5344_s5 + $0xd8] sm:$0xff] %vm2592_vm1, %v2491_v48  ;;  %v2490_v52 = vadd.f32 %v4457_v10, %v1949_v49  ;;  %v1964_v53 = vadd.f32 %v3480_v51, %v3286_v50  ;;  %3625 = vmatprep.mubr.msk.f32.mxu1 %vm278_vm0, %v146_v47  ;;  %v869_v56 = vpop.f32.mrf.mxu0 }
 0x100   :  { %v1958_v57 = vpop.f32.mrf.mxu1 }
 0x101   :  { %2619 = vst.msk [vmem:[%s5344_s5 + $0xd0] sm:$0xff] %vm2592_vm1, %v2490_v52  ;;  %v2493_v58 = vadd.f32 %v4457_v10, %v1964_v53  ;;  %v1959_v59 = vadd.f32 %v1958_v57, %v869_v56  ;;  %v3289_v60 = vpop.f32.mrf.mxu0  ;;  %3432 = vmatmul.mubr.msk.f32.gmra.mxu0 %vm278_vm0, %v276_v54 }
 0x102   :  { %v3483_v61 = vpop.f32.mrf.mxu1  ;;  %3626 = vmatmul.mubr.msk.f32.gmra.mxu1 %vm278_vm0, %v147_v55 }
 0x103   :  { %2622 = vst.msk [vmem:[%s5344_s5 + $0xe8] sm:$0xff] %vm2592_vm1, %v2493_v58  ;;  %v2492_v62 = vadd.f32 %v4457_v10, %v1959_v59  ;;  %v1974_v63 = vadd.f32 %v3483_v61, %v3289_v60  ;;  %v879_v0 = vpop.f32.mrf.mxu0 }
 0x104   :  { %v1968_v1 = vpop.f32.mrf.mxu1 }
 0x105   :  { %2621 = vst.msk [vmem:[%s5344_s5 + $0xe0] sm:$0xff] %vm2592_vm1, %v2492_v62  ;;  %v2495_v2 = vadd.f32 %v4457_v10, %v1974_v63  ;;  %v1969_v3 = vadd.f32 %v1968_v1, %v879_v0  ;;  %v3292_v4 = vpop.f32.mrf.mxu0 }
 0x106   :  { %v3486_v5 = vpop.f32.mrf.mxu1 }
 0x107   :  { %2624 = vst.msk [vmem:[%s5344_s5 + $0xf8] sm:$0xff] %vm2592_vm1, %v2495_v2  ;;  %v2494_v6 = vadd.f32 %v4457_v10, %v1969_v3  ;;  %v1984_v7 = vadd.f32 %v3486_v5, %v3292_v4  ;;  %v889_v8 = vpop.f32.mrf.mxu0 }
 0x108   :  { %v1978_v9 = vpop.f32.mrf.mxu1 }
 0x109   :  { %2623 = vst.msk [vmem:[%s5344_s5 + $0xf0] sm:$0xff] %vm2592_vm1, %v2494_v6  ;;  %v2497_v11 = vadd.f32 %v4457_v10, %v1984_v7  ;;  %v1979_v12 = vadd.f32 %v1978_v9, %v889_v8  ;;  %v3295_v13 = vpop.f32.mrf.mxu0 }
 0x10a   :  { %v3489_v14 = vpop.f32.mrf.mxu1 }
 0x10b   :  { %2626 = vst.msk [vmem:[%s5344_s5 + $0x108] sm:$0xff] %vm2592_vm1, %v2497_v11  ;;  %v2496_v15 = vadd.f32 %v4457_v10, %v1979_v12  ;;  %v1994_v16 = vadd.f32 %v3489_v14, %v3295_v13  ;;  %v899_v17 = vpop.f32.mrf.mxu0 }
 0x10c   :  { %v1988_v18 = vpop.f32.mrf.mxu1 }
 0x10d   :  { %2625 = vst.msk [vmem:[%s5344_s5 + $0x100] sm:$0xff] %vm2592_vm1, %v2496_v15  ;;  %v2499_v19 = vadd.f32 %v4457_v10, %v1994_v16  ;;  %v1989_v20 = vadd.f32 %v1988_v18, %v899_v17  ;;  %v3298_v21 = vpop.f32.mrf.mxu0 }
 0x10e   :  { %v3492_v22 = vpop.f32.mrf.mxu1 }
 0x10f   :  { %2628 = vst.msk [vmem:[%s5344_s5 + $0x118] sm:$0xff] %vm2592_vm1, %v2499_v19  ;;  %v2498_v23 = vadd.f32 %v4457_v10, %v1989_v20  ;;  %v2004_v24 = vadd.f32 %v3492_v22, %v3298_v21  ;;  %v909_v25 = vpop.f32.mrf.mxu0 }
 0x110   :  { %v1998_v26 = vpop.f32.mrf.mxu1 }
 0x111   :  { %2627 = vst.msk [vmem:[%s5344_s5 + $0x110] sm:$0xff] %vm2592_vm1, %v2498_v23  ;;  %v2501_v27 = vadd.f32 %v4457_v10, %v2004_v24  ;;  %v1999_v28 = vadd.f32 %v1998_v26, %v909_v25  ;;  %v3301_v29 = vpop.f32.mrf.mxu0 }
 0x112   :  { %v3495_v30 = vpop.f32.mrf.mxu1 }
 0x113   :  { %2630 = vst.msk [vmem:[%s5344_s5 + $0x128] sm:$0xff] %vm2592_vm1, %v2501_v27  ;;  %v2500_v31 = vadd.f32 %v4457_v10, %v1999_v28  ;;  %v2014_v32 = vadd.f32 %v3495_v30, %v3301_v29  ;;  %v919_v33 = vpop.f32.mrf.mxu0 }
 0x114   :  { %v2008_v34 = vpop.f32.mrf.mxu1 }
 0x115   :  { %2629 = vst.msk [vmem:[%s5344_s5 + $0x120] sm:$0xff] %vm2592_vm1, %v2500_v31  ;;  %v2503_v35 = vadd.f32 %v4457_v10, %v2014_v32  ;;  %v2009_v36 = vadd.f32 %v2008_v34, %v919_v33  ;;  %v3304_v37 = vpop.f32.mrf.mxu0 }
 0x116   :  { %v3498_v38 = vpop.f32.mrf.mxu1 }
 0x117   :  { %2632 = vst.msk [vmem:[%s5344_s5 + $0x138] sm:$0xff] %vm2592_vm1, %v2503_v35  ;;  %v2502_v39 = vadd.f32 %v4457_v10, %v2009_v36  ;;  %v2024_v40 = vadd.f32 %v3498_v38, %v3304_v37  ;;  %v929_v41 = vpop.f32.mrf.mxu0 }
 0x118   :  { %v2018_v42 = vpop.f32.mrf.mxu1 }
 0x119   :  { %2631 = vst.msk [vmem:[%s5344_s5 + $0x130] sm:$0xff] %vm2592_vm1, %v2502_v39  ;;  %v2505_v43 = vadd.f32 %v4457_v10, %v2024_v40  ;;  %v2019_v44 = vadd.f32 %v2018_v42, %v929_v41  ;;  %v3307_v45 = vpop.f32.mrf.mxu0 }
 0x11a   :  { %v3501_v46 = vpop.f32.mrf.mxu1 }
 0x11b   :  { %2634 = vst.msk [vmem:[%s5344_s5 + $0x148] sm:$0xff] %vm2592_vm1, %v2505_v43  ;;  %v2504_v47 = vadd.f32 %v4457_v10, %v2019_v44  ;;  %v2034_v48 = vadd.f32 %v3501_v46, %v3307_v45  ;;  %v939_v49 = vpop.f32.mrf.mxu0 }
 0x11c   :  { %v2028_v50 = vpop.f32.mrf.mxu1 }
 0x11d   :  { %2633 = vst.msk [vmem:[%s5344_s5 + $0x140] sm:$0xff] %vm2592_vm1, %v2504_v47  ;;  %v2507_v51 = vadd.f32 %v4457_v10, %v2034_v48  ;;  %v2029_v52 = vadd.f32 %v2028_v50, %v939_v49  ;;  %v3310_v53 = vpop.f32.mrf.mxu0 }
 0x11e   :  { %v3504_v54 = vpop.f32.mrf.mxu1 }
 0x11f   :  { %2636 = vst.msk [vmem:[%s5344_s5 + $0x158] sm:$0xff] %vm2592_vm1, %v2507_v51  ;;  %v2506_v55 = vadd.f32 %v4457_v10, %v2029_v52  ;;  %v2044_v56 = vadd.f32 %v3504_v54, %v3310_v53  ;;  %v949_v57 = vpop.f32.mrf.mxu0 }
 0x120   :  { %v2038_v58 = vpop.f32.mrf.mxu1 }
 0x121   :  { %2635 = vst.msk [vmem:[%s5344_s5 + $0x150] sm:$0xff] %vm2592_vm1, %v2506_v55  ;;  %v2509_v59 = vadd.f32 %v4457_v10, %v2044_v56  ;;  %v2039_v60 = vadd.f32 %v2038_v58, %v949_v57  ;;  %v3313_v61 = vpop.f32.mrf.mxu0 }
 0x122   :  { %v3507_v62 = vpop.f32.mrf.mxu1 }
 0x123   :  { %2638 = vst.msk [vmem:[%s5344_s5 + $0x168] sm:$0xff] %vm2592_vm1, %v2509_v59  ;;  %v2508_v63 = vadd.f32 %v4457_v10, %v2039_v60  ;;  %v2054_v0 = vadd.f32 %v3507_v62, %v3313_v61  ;;  %v959_v1 = vpop.f32.mrf.mxu0 }
 0x124   :  { %v2048_v2 = vpop.f32.mrf.mxu1 }
 0x125   :  { %2637 = vst.msk [vmem:[%s5344_s5 + $0x160] sm:$0xff] %vm2592_vm1, %v2508_v63  ;;  %v2511_v3 = vadd.f32 %v4457_v10, %v2054_v0  ;;  %v2049_v4 = vadd.f32 %v2048_v2, %v959_v1  ;;  %v3316_v5 = vpop.f32.mrf.mxu0 }
 0x126   :  { %v3510_v6 = vpop.f32.mrf.mxu1 }
 0x127   :  { %2640 = vst.msk [vmem:[%s5344_s5 + $0x178] sm:$0xff] %vm2592_vm1, %v2511_v3  ;;  %v2510_v7 = vadd.f32 %v4457_v10, %v2049_v4  ;;  %v2064_v8 = vadd.f32 %v3510_v6, %v3316_v5  ;;  %v969_v9 = vpop.f32.mrf.mxu0 }
 0x128   :  { %v2058_v11 = vpop.f32.mrf.mxu1 }
 0x129   :  { %2639 = vst.msk [vmem:[%s5344_s5 + $0x170] sm:$0xff] %vm2592_vm1, %v2510_v7  ;;  %v2513_v12 = vadd.f32 %v4457_v10, %v2064_v8  ;;  %v2059_v13 = vadd.f32 %v2058_v11, %v969_v9  ;;  %v3319_v14 = vpop.f32.mrf.mxu0 }
 0x12a   :  { %v3513_v15 = vpop.f32.mrf.mxu1 }
 0x12b   :  { %2642 = vst.msk [vmem:[%s5344_s5 + $0x188] sm:$0xff] %vm2592_vm1, %v2513_v12  ;;  %v2512_v16 = vadd.f32 %v4457_v10, %v2059_v13  ;;  %v2074_v17 = vadd.f32 %v3513_v15, %v3319_v14  ;;  %v979_v18 = vpop.f32.mrf.mxu0 }
 0x12c   :  { %v2068_v19 = vpop.f32.mrf.mxu1 }
 0x12d   :  { %2641 = vst.msk [vmem:[%s5344_s5 + $0x180] sm:$0xff] %vm2592_vm1, %v2512_v16  ;;  %v2515_v20 = vadd.f32 %v4457_v10, %v2074_v17  ;;  %v2069_v21 = vadd.f32 %v2068_v19, %v979_v18  ;;  %v3322_v22 = vpop.f32.mrf.mxu0 }
 0x12e   :  { %v3516_v23 = vpop.f32.mrf.mxu1 }
 0x12f   :  { %2644 = vst.msk [vmem:[%s5344_s5 + $0x198] sm:$0xff] %vm2592_vm1, %v2515_v20  ;;  %v2514_v24 = vadd.f32 %v4457_v10, %v2069_v21  ;;  %v2084_v25 = vadd.f32 %v3516_v23, %v3322_v22  ;;  %v989_v26 = vpop.f32.mrf.mxu0 }
 0x130   :  { %v2078_v27 = vpop.f32.mrf.mxu1 }
 0x131   :  { %2643 = vst.msk [vmem:[%s5344_s5 + $0x190] sm:$0xff] %vm2592_vm1, %v2514_v24  ;;  %v2517_v28 = vadd.f32 %v4457_v10, %v2084_v25  ;;  %v2079_v29 = vadd.f32 %v2078_v27, %v989_v26  ;;  %v3325_v30 = vpop.f32.mrf.mxu0 }
 0x132   :  { %v3519_v31 = vpop.f32.mrf.mxu1 }
 0x133   :  { %2646 = vst.msk [vmem:[%s5344_s5 + $0x1a8] sm:$0xff] %vm2592_vm1, %v2517_v28  ;;  %v2516_v32 = vadd.f32 %v4457_v10, %v2079_v29  ;;  %v2094_v33 = vadd.f32 %v3519_v31, %v3325_v30  ;;  %v999_v34 = vpop.f32.mrf.mxu0 }
 0x134   :  { %v2088_v35 = vpop.f32.mrf.mxu1 }
 0x135   :  { %2645 = vst.msk [vmem:[%s5344_s5 + $0x1a0] sm:$0xff] %vm2592_vm1, %v2516_v32  ;;  %v2519_v36 = vadd.f32 %v4457_v10, %v2094_v33  ;;  %v2089_v37 = vadd.f32 %v2088_v35, %v999_v34  ;;  %v3328_v38 = vpop.f32.mrf.mxu0 }
 0x136   :  { %v3522_v39 = vpop.f32.mrf.mxu1 }
 0x137   :  { %2648 = vst.msk [vmem:[%s5344_s5 + $0x1b8] sm:$0xff] %vm2592_vm1, %v2519_v36  ;;  %v2518_v40 = vadd.f32 %v4457_v10, %v2089_v37  ;;  %v2104_v41 = vadd.f32 %v3522_v39, %v3328_v38  ;;  %v1009_v42 = vpop.f32.mrf.mxu0 }
 0x138   :  { %v2098_v43 = vpop.f32.mrf.mxu1 }
 0x139   :  { %2647 = vst.msk [vmem:[%s5344_s5 + $0x1b0] sm:$0xff] %vm2592_vm1, %v2518_v40  ;;  %v2521_v44 = vadd.f32 %v4457_v10, %v2104_v41  ;;  %v2099_v45 = vadd.f32 %v2098_v43, %v1009_v42  ;;  %v3331_v46 = vpop.f32.mrf.mxu0 }
 0x13a   :  { %v3525_v47 = vpop.f32.mrf.mxu1 }
 0x13b   :  { %2650 = vst.msk [vmem:[%s5344_s5 + $0x1c8] sm:$0xff] %vm2592_vm1, %v2521_v44  ;;  %v2520_v48 = vadd.f32 %v4457_v10, %v2099_v45  ;;  %v2114_v49 = vadd.f32 %v3525_v47, %v3331_v46  ;;  %v1019_v50 = vpop.f32.mrf.mxu0 }
 0x13c   :  { %v2108_v51 = vpop.f32.mrf.mxu1 }
 0x13d   :  { %2649 = vst.msk [vmem:[%s5344_s5 + $0x1c0] sm:$0xff] %vm2592_vm1, %v2520_v48  ;;  %v2523_v52 = vadd.f32 %v4457_v10, %v2114_v49  ;;  %v2109_v53 = vadd.f32 %v2108_v51, %v1019_v50  ;;  %v3334_v54 = vpop.f32.mrf.mxu0 }
 0x13e   :  { %v3528_v55 = vpop.f32.mrf.mxu1 }
 0x13f   :  { %2652 = vst.msk [vmem:[%s5344_s5 + $0x1d8] sm:$0xff] %vm2592_vm1, %v2523_v52  ;;  %v2522_v56 = vadd.f32 %v4457_v10, %v2109_v53  ;;  %v2124_v57 = vadd.f32 %v3528_v55, %v3334_v54  ;;  %v1029_v58 = vpop.f32.mrf.mxu0 }
 0x140   :  { %v2118_v59 = vpop.f32.mrf.mxu1 }
 0x141   :  { %2651 = vst.msk [vmem:[%s5344_s5 + $0x1d0] sm:$0xff] %vm2592_vm1, %v2522_v56  ;;  %v2525_v60 = vadd.f32 %v4457_v10, %v2124_v57  ;;  %v2119_v61 = vadd.f32 %v2118_v59, %v1029_v58  ;;  %v3337_v62 = vpop.f32.mrf.mxu0 }
 0x142   :  { %v3531_v63 = vpop.f32.mrf.mxu1 }
 0x143   :  { %2654 = vst.msk [vmem:[%s5344_s5 + $0x1e8] sm:$0xff] %vm2592_vm1, %v2525_v60  ;;  %v2524_v0 = vadd.f32 %v4457_v10, %v2119_v61  ;;  %v2134_v1 = vadd.f32 %v3531_v63, %v3337_v62  ;;  %v1039_v2 = vpop.f32.mrf.mxu0 }
 0x144   :  { %v2128_v3 = vpop.f32.mrf.mxu1 }
 0x145   :  { %2653 = vst.msk [vmem:[%s5344_s5 + $0x1e0] sm:$0xff] %vm2592_vm1, %v2524_v0  ;;  %v2527_v4 = vadd.f32 %v4457_v10, %v2134_v1  ;;  %v2129_v5 = vadd.f32 %v2128_v3, %v1039_v2  ;;  %v3340_v6 = vpop.f32.mrf.mxu0 }
 0x146   :  { %v3534_v7 = vpop.f32.mrf.mxu1 }
 0x147   :  { %2656 = vst.msk [vmem:[%s5344_s5 + $0x1f8] sm:$0xff] %vm2592_vm1, %v2527_v4  ;;  %v2526_v8 = vadd.f32 %v4457_v10, %v2129_v5  ;;  %v2144_v9 = vadd.f32 %v3534_v7, %v3340_v6  ;;  %v1049_v11 = vpop.f32.mrf.mxu0  ;;  %v5087_v5 = vld [vmem:[%s5343_s4] ss:$0 sm:$0xff] }
 0x148   :  { %v2138_v12 = vpop.f32.mrf.mxu1 }
 0x149   :  { %2655 = vst.msk [vmem:[%s5344_s5 + $0x1f0] sm:$0xff] %vm2592_vm1, %v2526_v8  ;;  %v2529_v13 = vadd.f32 %v4457_v10, %v2144_v9  ;;  %v2139_v14 = vadd.f32 %v2138_v12, %v1049_v11  ;;  %v3343_v15 = vpop.f32.mrf.mxu0 }
 0x14a   :  { %v3537_v16 = vpop.f32.mrf.mxu1 }
 0x14b   :  { %2658 = vst.msk [vmem:[%s5344_s5 + $0x208] sm:$0xff] %vm2592_vm1, %v2529_v13  ;;  %v2528_v17 = vadd.f32 %v4457_v10, %v2139_v14  ;;  %v2154_v18 = vadd.f32 %v3537_v16, %v3343_v15  ;;  %v1059_v19 = vpop.f32.mrf.mxu0 }
 0x14c   :  { %v2148_v20 = vpop.f32.mrf.mxu1 }
 0x14d   :  { %2657 = vst.msk [vmem:[%s5344_s5 + $0x200] sm:$0xff] %vm2592_vm1, %v2528_v17  ;;  %v2531_v21 = vadd.f32 %v4457_v10, %v2154_v18  ;;  %v2149_v22 = vadd.f32 %v2148_v20, %v1059_v19  ;;  %v3346_v23 = vpop.f32.mrf.mxu0 }
 0x14e   :  { %v3540_v24 = vpop.f32.mrf.mxu1 }
 0x14f   :  { %2660 = vst.msk [vmem:[%s5344_s5 + $0x218] sm:$0xff] %vm2592_vm1, %v2531_v21  ;;  %v2530_v25 = vadd.f32 %v4457_v10, %v2149_v22  ;;  %v2164_v26 = vadd.f32 %v3540_v24, %v3346_v23  ;;  %v1069_v27 = vpop.f32.mrf.mxu0 }
 0x150   :  { %v2158_v28 = vpop.f32.mrf.mxu1 }
 0x151   :  { %2659 = vst.msk [vmem:[%s5344_s5 + $0x210] sm:$0xff] %vm2592_vm1, %v2530_v25  ;;  %v2533_v29 = vadd.f32 %v4457_v10, %v2164_v26  ;;  %v2159_v30 = vadd.f32 %v2158_v28, %v1069_v27  ;;  %v3349_v31 = vpop.f32.mrf.mxu0 }
 0x152   :  { %v3543_v32 = vpop.f32.mrf.mxu1 }
 0x153   :  { %2662 = vst.msk [vmem:[%s5344_s5 + $0x228] sm:$0xff] %vm2592_vm1, %v2533_v29  ;;  %v2532_v33 = vadd.f32 %v4457_v10, %v2159_v30  ;;  %v2174_v34 = vadd.f32 %v3543_v32, %v3349_v31  ;;  %v1079_v35 = vpop.f32.mrf.mxu0 }
 0x154   :  { %v2168_v36 = vpop.f32.mrf.mxu1 }
 0x155   :  { %2661 = vst.msk [vmem:[%s5344_s5 + $0x220] sm:$0xff] %vm2592_vm1, %v2532_v33  ;;  %v2535_v37 = vadd.f32 %v4457_v10, %v2174_v34  ;;  %v2169_v38 = vadd.f32 %v2168_v36, %v1079_v35  ;;  %v3352_v39 = vpop.f32.mrf.mxu0 }
 0x156   :  { %v3546_v40 = vpop.f32.mrf.mxu1 }
 0x157   :  { %2664 = vst.msk [vmem:[%s5344_s5 + $0x238] sm:$0xff] %vm2592_vm1, %v2535_v37  ;;  %v2534_v41 = vadd.f32 %v4457_v10, %v2169_v38  ;;  %v2184_v42 = vadd.f32 %v3546_v40, %v3352_v39  ;;  %v1089_v43 = vpop.f32.mrf.mxu0 }
 0x158   :  { %v2178_v44 = vpop.f32.mrf.mxu1 }
 0x159   :  { %2663 = vst.msk [vmem:[%s5344_s5 + $0x230] sm:$0xff] %vm2592_vm1, %v2534_v41  ;;  %v2537_v45 = vadd.f32 %v4457_v10, %v2184_v42  ;;  %v2179_v46 = vadd.f32 %v2178_v44, %v1089_v43  ;;  %v3355_v47 = vpop.f32.mrf.mxu0 }
 0x15a   :  { %v3549_v48 = vpop.f32.mrf.mxu1 }
 0x15b   :  { %2666 = vst.msk [vmem:[%s5344_s5 + $0x248] sm:$0xff] %vm2592_vm1, %v2537_v45  ;;  %v2536_v49 = vadd.f32 %v4457_v10, %v2179_v46  ;;  %v2194_v50 = vadd.f32 %v3549_v48, %v3355_v47  ;;  %v1099_v51 = vpop.f32.mrf.mxu0 }
 0x15c   :  { %v2188_v52 = vpop.f32.mrf.mxu1 }
 0x15d   :  { %2665 = vst.msk [vmem:[%s5344_s5 + $0x240] sm:$0xff] %vm2592_vm1, %v2536_v49  ;;  %v2539_v53 = vadd.f32 %v4457_v10, %v2194_v50  ;;  %v2189_v54 = vadd.f32 %v2188_v52, %v1099_v51  ;;  %v3358_v55 = vpop.f32.mrf.mxu0 }
 0x15e   :  { %v3552_v56 = vpop.f32.mrf.mxu1 }
 0x15f   :  { %2668 = vst.msk [vmem:[%s5344_s5 + $0x258] sm:$0xff] %vm2592_vm1, %v2539_v53  ;;  %v2538_v57 = vadd.f32 %v4457_v10, %v2189_v54  ;;  %v2204_v58 = vadd.f32 %v3552_v56, %v3358_v55  ;;  %v1109_v59 = vpop.f32.mrf.mxu0 }
 0x160   :  { %v2198_v60 = vpop.f32.mrf.mxu1 }
 0x161   :  { %2667 = vst.msk [vmem:[%s5344_s5 + $0x250] sm:$0xff] %vm2592_vm1, %v2538_v57  ;;  %v2541_v61 = vadd.f32 %v4457_v10, %v2204_v58  ;;  %v2199_v62 = vadd.f32 %v2198_v60, %v1109_v59  ;;  %v3361_v63 = vpop.f32.mrf.mxu0 }
 0x162   :  { %v3555_v0 = vpop.f32.mrf.mxu1 }
 0x163   :  { %2670 = vst.msk [vmem:[%s5344_s5 + $0x268] sm:$0xff] %vm2592_vm1, %v2541_v61  ;;  %v2540_v1 = vadd.f32 %v4457_v10, %v2199_v62  ;;  %v2214_v2 = vadd.f32 %v3555_v0, %v3361_v63  ;;  %v1119_v3 = vpop.f32.mrf.mxu0 }
 0x164   :  { %v2208_v4 = vpop.f32.mrf.mxu1 }
 0x165   :  { %2669 = vst.msk [vmem:[%s5344_s5 + $0x260] sm:$0xff] %vm2592_vm1, %v2540_v1  ;;  %v2543_v6 = vadd.f32 %v5087_v5, %v2214_v2  ;;  %v2209_v7 = vadd.f32 %v2208_v4, %v1119_v3  ;;  %v3364_v8 = vpop.f32.mrf.mxu0 }
 0x166   :  { %v3558_v9 = vpop.f32.mrf.mxu1 }
 0x167   :  { %2672 = vst.msk [vmem:[%s5344_s5 + $0x278] sm:$0xff] %vm2592_vm1, %v2543_v6  ;;  %v2542_v10 = vadd.f32 %v5087_v5, %v2209_v7  ;;  %v2224_v11 = vadd.f32 %v3558_v9, %v3364_v8  ;;  %v1129_v12 = vpop.f32.mrf.mxu0 }
 0x168   :  { %v2218_v13 = vpop.f32.mrf.mxu1 }
 0x169   :  { %2671 = vst.msk [vmem:[%s5344_s5 + $0x270] sm:$0xff] %vm2592_vm1, %v2542_v10  ;;  %v2545_v14 = vadd.f32 %v5087_v5, %v2224_v11  ;;  %v2219_v15 = vadd.f32 %v2218_v13, %v1129_v12  ;;  %v3367_v16 = vpop.f32.mrf.mxu0 }
 0x16a   :  { %v3561_v17 = vpop.f32.mrf.mxu1 }
 0x16b   :  { %2674 = vst.msk [vmem:[%s5344_s5 + $0x288] sm:$0xff] %vm2592_vm1, %v2545_v14  ;;  %v2544_v18 = vadd.f32 %v5087_v5, %v2219_v15  ;;  %v2234_v19 = vadd.f32 %v3561_v17, %v3367_v16  ;;  %v1139_v20 = vpop.f32.mrf.mxu0 }
 0x16c   :  { %v2228_v21 = vpop.f32.mrf.mxu1 }
 0x16d   :  { %2673 = vst.msk [vmem:[%s5344_s5 + $0x280] sm:$0xff] %vm2592_vm1, %v2544_v18  ;;  %v2547_v22 = vadd.f32 %v5087_v5, %v2234_v19  ;;  %v2229_v23 = vadd.f32 %v2228_v21, %v1139_v20  ;;  %v3370_v24 = vpop.f32.mrf.mxu0 }
 0x16e   :  { %v3564_v25 = vpop.f32.mrf.mxu1 }
 0x16f   :  { %2676 = vst.msk [vmem:[%s5344_s5 + $0x298] sm:$0xff] %vm2592_vm1, %v2547_v22  ;;  %v2546_v26 = vadd.f32 %v5087_v5, %v2229_v23  ;;  %v2244_v27 = vadd.f32 %v3564_v25, %v3370_v24  ;;  %v1149_v28 = vpop.f32.mrf.mxu0 }
 0x170   :  { %v2238_v29 = vpop.f32.mrf.mxu1 }
 0x171   :  { %2675 = vst.msk [vmem:[%s5344_s5 + $0x290] sm:$0xff] %vm2592_vm1, %v2546_v26  ;;  %v2549_v30 = vadd.f32 %v5087_v5, %v2244_v27  ;;  %v2239_v31 = vadd.f32 %v2238_v29, %v1149_v28  ;;  %v3373_v32 = vpop.f32.mrf.mxu0 }
 0x172   :  { %v3567_v33 = vpop.f32.mrf.mxu1 }
 0x173   :  { %2678 = vst.msk [vmem:[%s5344_s5 + $0x2a8] sm:$0xff] %vm2592_vm1, %v2549_v30  ;;  %v2548_v34 = vadd.f32 %v5087_v5, %v2239_v31  ;;  %v2254_v35 = vadd.f32 %v3567_v33, %v3373_v32  ;;  %v1159_v36 = vpop.f32.mrf.mxu0 }
 0x174   :  { %v2248_v37 = vpop.f32.mrf.mxu1 }
 0x175   :  { %2677 = vst.msk [vmem:[%s5344_s5 + $0x2a0] sm:$0xff] %vm2592_vm1, %v2548_v34  ;;  %v2551_v38 = vadd.f32 %v5087_v5, %v2254_v35  ;;  %v2249_v39 = vadd.f32 %v2248_v37, %v1159_v36  ;;  %v3376_v40 = vpop.f32.mrf.mxu0 }
 0x176   :  { %v3570_v41 = vpop.f32.mrf.mxu1 }
 0x177   :  { %2680 = vst.msk [vmem:[%s5344_s5 + $0x2b8] sm:$0xff] %vm2592_vm1, %v2551_v38  ;;  %v2550_v42 = vadd.f32 %v5087_v5, %v2249_v39  ;;  %v2264_v43 = vadd.f32 %v3570_v41, %v3376_v40  ;;  %v1169_v44 = vpop.f32.mrf.mxu0 }
 0x178   :  { %v2258_v45 = vpop.f32.mrf.mxu1 }
 0x179   :  { %2679 = vst.msk [vmem:[%s5344_s5 + $0x2b0] sm:$0xff] %vm2592_vm1, %v2550_v42  ;;  %v2553_v46 = vadd.f32 %v5087_v5, %v2264_v43  ;;  %v2259_v47 = vadd.f32 %v2258_v45, %v1169_v44  ;;  %v3379_v48 = vpop.f32.mrf.mxu0 }
 0x17a   :  { %v3573_v49 = vpop.f32.mrf.mxu1 }
 0x17b   :  { %2682 = vst.msk [vmem:[%s5344_s5 + $0x2c8] sm:$0xff] %vm2592_vm1, %v2553_v46  ;;  %v2552_v50 = vadd.f32 %v5087_v5, %v2259_v47  ;;  %v2274_v51 = vadd.f32 %v3573_v49, %v3379_v48  ;;  %v1179_v52 = vpop.f32.mrf.mxu0 }
 0x17c   :  { %v2268_v53 = vpop.f32.mrf.mxu1 }
 0x17d   :  { %2681 = vst.msk [vmem:[%s5344_s5 + $0x2c0] sm:$0xff] %vm2592_vm1, %v2552_v50  ;;  %v2555_v54 = vadd.f32 %v5087_v5, %v2274_v51  ;;  %v2269_v55 = vadd.f32 %v2268_v53, %v1179_v52  ;;  %v3382_v56 = vpop.f32.mrf.mxu0 }
 0x17e   :  { %v3576_v57 = vpop.f32.mrf.mxu1 }
 0x17f   :  { %2684 = vst.msk [vmem:[%s5344_s5 + $0x2d8] sm:$0xff] %vm2592_vm1, %v2555_v54  ;;  %v2554_v58 = vadd.f32 %v5087_v5, %v2269_v55  ;;  %v2284_v59 = vadd.f32 %v3576_v57, %v3382_v56  ;;  %v1189_v60 = vpop.f32.mrf.mxu0 }
 0x180   :  { %v2278_v61 = vpop.f32.mrf.mxu1 }
 0x181   :  { %2683 = vst.msk [vmem:[%s5344_s5 + $0x2d0] sm:$0xff] %vm2592_vm1, %v2554_v58  ;;  %v2557_v62 = vadd.f32 %v5087_v5, %v2284_v59  ;;  %v2279_v63 = vadd.f32 %v2278_v61, %v1189_v60  ;;  %v3385_v0 = vpop.f32.mrf.mxu0 }
 0x182   :  { %v3579_v1 = vpop.f32.mrf.mxu1 }
 0x183   :  { %2686 = vst.msk [vmem:[%s5344_s5 + $0x2e8] sm:$0xff] %vm2592_vm1, %v2557_v62  ;;  %v2556_v2 = vadd.f32 %v5087_v5, %v2279_v63  ;;  %v2294_v3 = vadd.f32 %v3579_v1, %v3385_v0  ;;  %v1199_v4 = vpop.f32.mrf.mxu0 }
 0x184   :  { %v2288_v6 = vpop.f32.mrf.mxu1 }
 0x185   :  { %2685 = vst.msk [vmem:[%s5344_s5 + $0x2e0] sm:$0xff] %vm2592_vm1, %v2556_v2  ;;  %v2559_v7 = vadd.f32 %v5087_v5, %v2294_v3  ;;  %v2289_v8 = vadd.f32 %v2288_v6, %v1199_v4  ;;  %v3388_v9 = vpop.f32.mrf.mxu0 }
 0x186   :  { %v3582_v10 = vpop.f32.mrf.mxu1 }
 0x187   :  { %2688 = vst.msk [vmem:[%s5344_s5 + $0x2f8] sm:$0xff] %vm2592_vm1, %v2559_v7  ;;  %v2558_v11 = vadd.f32 %v5087_v5, %v2289_v8  ;;  %v2304_v12 = vadd.f32 %v3582_v10, %v3388_v9  ;;  %v1209_v13 = vpop.f32.mrf.mxu0 }
 0x188   :  { %v2298_v14 = vpop.f32.mrf.mxu1 }
 0x189   :  { %2687 = vst.msk [vmem:[%s5344_s5 + $0x2f0] sm:$0xff] %vm2592_vm1, %v2558_v11  ;;  %v2561_v15 = vadd.f32 %v5087_v5, %v2304_v12  ;;  %v2299_v16 = vadd.f32 %v2298_v14, %v1209_v13  ;;  %v3391_v17 = vpop.f32.mrf.mxu0 }
 0x18a   :  { %v3585_v18 = vpop.f32.mrf.mxu1 }
 0x18b   :  { %2690 = vst.msk [vmem:[%s5344_s5 + $0x308] sm:$0xff] %vm2592_vm1, %v2561_v15  ;;  %v2560_v19 = vadd.f32 %v5087_v5, %v2299_v16  ;;  %v2314_v20 = vadd.f32 %v3585_v18, %v3391_v17  ;;  %v1219_v21 = vpop.f32.mrf.mxu0 }
 0x18c   :  { %v2308_v22 = vpop.f32.mrf.mxu1 }
 0x18d   :  { %2689 = vst.msk [vmem:[%s5344_s5 + $0x300] sm:$0xff] %vm2592_vm1, %v2560_v19  ;;  %v2563_v23 = vadd.f32 %v5087_v5, %v2314_v20  ;;  %v2309_v24 = vadd.f32 %v2308_v22, %v1219_v21  ;;  %v3394_v25 = vpop.f32.mrf.mxu0 }
 0x18e   :  { %v3588_v26 = vpop.f32.mrf.mxu1 }
 0x18f   :  { %2692 = vst.msk [vmem:[%s5344_s5 + $0x318] sm:$0xff] %vm2592_vm1, %v2563_v23  ;;  %v2562_v27 = vadd.f32 %v5087_v5, %v2309_v24  ;;  %v2324_v28 = vadd.f32 %v3588_v26, %v3394_v25  ;;  %v1229_v29 = vpop.f32.mrf.mxu0 }
 0x190   :  { %v2318_v30 = vpop.f32.mrf.mxu1 }
 0x191   :  { %2691 = vst.msk [vmem:[%s5344_s5 + $0x310] sm:$0xff] %vm2592_vm1, %v2562_v27  ;;  %v2565_v31 = vadd.f32 %v5087_v5, %v2324_v28  ;;  %v2319_v32 = vadd.f32 %v2318_v30, %v1229_v29  ;;  %v3397_v33 = vpop.f32.mrf.mxu0 }
 0x192   :  { %v3591_v34 = vpop.f32.mrf.mxu1 }
 0x193   :  { %2694 = vst.msk [vmem:[%s5344_s5 + $0x328] sm:$0xff] %vm2592_vm1, %v2565_v31  ;;  %v2564_v35 = vadd.f32 %v5087_v5, %v2319_v32  ;;  %v2334_v36 = vadd.f32 %v3591_v34, %v3397_v33  ;;  %v1239_v37 = vpop.f32.mrf.mxu0 }
 0x194   :  { %v2328_v38 = vpop.f32.mrf.mxu1 }
 0x195   :  { %2693 = vst.msk [vmem:[%s5344_s5 + $0x320] sm:$0xff] %vm2592_vm1, %v2564_v35  ;;  %v2567_v39 = vadd.f32 %v5087_v5, %v2334_v36  ;;  %v2329_v40 = vadd.f32 %v2328_v38, %v1239_v37  ;;  %v3400_v41 = vpop.f32.mrf.mxu0 }
 0x196   :  { %v3594_v42 = vpop.f32.mrf.mxu1 }
 0x197   :  { %2696 = vst.msk [vmem:[%s5344_s5 + $0x338] sm:$0xff] %vm2592_vm1, %v2567_v39  ;;  %v2566_v43 = vadd.f32 %v5087_v5, %v2329_v40  ;;  %v2344_v44 = vadd.f32 %v3594_v42, %v3400_v41  ;;  %v1249_v45 = vpop.f32.mrf.mxu0 }
 0x198   :  { %v2338_v46 = vpop.f32.mrf.mxu1 }
 0x199   :  { %2695 = vst.msk [vmem:[%s5344_s5 + $0x330] sm:$0xff] %vm2592_vm1, %v2566_v43  ;;  %v2569_v47 = vadd.f32 %v5087_v5, %v2344_v44  ;;  %v2339_v48 = vadd.f32 %v2338_v46, %v1249_v45  ;;  %v3403_v49 = vpop.f32.mrf.mxu0 }
 0x19a   :  { %v3597_v50 = vpop.f32.mrf.mxu1 }
 0x19b   :  { %2698 = vst.msk [vmem:[%s5344_s5 + $0x348] sm:$0xff] %vm2592_vm1, %v2569_v47  ;;  %v2568_v51 = vadd.f32 %v5087_v5, %v2339_v48  ;;  %v2354_v52 = vadd.f32 %v3597_v50, %v3403_v49  ;;  %v1259_v53 = vpop.f32.mrf.mxu0 }
 0x19c   :  { %v2348_v54 = vpop.f32.mrf.mxu1 }
 0x19d   :  { %2697 = vst.msk [vmem:[%s5344_s5 + $0x340] sm:$0xff] %vm2592_vm1, %v2568_v51  ;;  %v2571_v55 = vadd.f32 %v5087_v5, %v2354_v52  ;;  %v2349_v56 = vadd.f32 %v2348_v54, %v1259_v53  ;;  %v3406_v57 = vpop.f32.mrf.mxu0 }
 0x19e   :  { %v3600_v58 = vpop.f32.mrf.mxu1 }
 0x19f   :  { %2700 = vst.msk [vmem:[%s5344_s5 + $0x358] sm:$0xff] %vm2592_vm1, %v2571_v55  ;;  %v2570_v59 = vadd.f32 %v5087_v5, %v2349_v56  ;;  %v2364_v60 = vadd.f32 %v3600_v58, %v3406_v57  ;;  %v1269_v61 = vpop.f32.mrf.mxu0 }
 0x1a0   :  { %v2358_v62 = vpop.f32.mrf.mxu1 }
 0x1a1   :  { %2699 = vst.msk [vmem:[%s5344_s5 + $0x350] sm:$0xff] %vm2592_vm1, %v2570_v59  ;;  %v2573_v63 = vadd.f32 %v5087_v5, %v2364_v60  ;;  %v2359_v0 = vadd.f32 %v2358_v62, %v1269_v61  ;;  %v3409_v1 = vpop.f32.mrf.mxu0 }
 0x1a2   :  { %v3603_v2 = vpop.f32.mrf.mxu1 }
 0x1a3   :  { %2702 = vst.msk [vmem:[%s5344_s5 + $0x368] sm:$0xff] %vm2592_vm1, %v2573_v63  ;;  %v2572_v3 = vadd.f32 %v5087_v5, %v2359_v0  ;;  %v2374_v4 = vadd.f32 %v3603_v2, %v3409_v1  ;;  %v1279_v6 = vpop.f32.mrf.mxu0 }
 0x1a4   :  { %v2368_v7 = vpop.f32.mrf.mxu1 }
 0x1a5   :  { %2701 = vst.msk [vmem:[%s5344_s5 + $0x360] sm:$0xff] %vm2592_vm1, %v2572_v3  ;;  %v2575_v8 = vadd.f32 %v5087_v5, %v2374_v4  ;;  %v2369_v9 = vadd.f32 %v2368_v7, %v1279_v6  ;;  %v3412_v10 = vpop.f32.mrf.mxu0 }
 0x1a6   :  { %v3606_v11 = vpop.f32.mrf.mxu1 }
 0x1a7   :  { %2704 = vst.msk [vmem:[%s5344_s5 + $0x378] sm:$0xff] %vm2592_vm1, %v2575_v8  ;;  %v2574_v12 = vadd.f32 %v5087_v5, %v2369_v9  ;;  %v2384_v13 = vadd.f32 %v3606_v11, %v3412_v10  ;;  %v1289_v14 = vpop.f32.mrf.mxu0 }
 0x1a8   :  { %v2378_v15 = vpop.f32.mrf.mxu1 }
 0x1a9   :  { %2703 = vst.msk [vmem:[%s5344_s5 + $0x370] sm:$0xff] %vm2592_vm1, %v2574_v12  ;;  %v2577_v16 = vadd.f32 %v5087_v5, %v2384_v13  ;;  %v2379_v17 = vadd.f32 %v2378_v15, %v1289_v14  ;;  %v3415_v18 = vpop.f32.mrf.mxu0 }
 0x1aa   :  { %v3609_v19 = vpop.f32.mrf.mxu1 }
 0x1ab   :  { %2706 = vst.msk [vmem:[%s5344_s5 + $0x388] sm:$0xff] %vm2592_vm1, %v2577_v16  ;;  %v2576_v20 = vadd.f32 %v5087_v5, %v2379_v17  ;;  %v2394_v21 = vadd.f32 %v3609_v19, %v3415_v18  ;;  %v1299_v22 = vpop.f32.mrf.mxu0 }
 0x1ac   :  { %v2388_v23 = vpop.f32.mrf.mxu1 }
 0x1ad   :  { %2705 = vst.msk [vmem:[%s5344_s5 + $0x380] sm:$0xff] %vm2592_vm1, %v2576_v20  ;;  %v2579_v24 = vadd.f32 %v5087_v5, %v2394_v21  ;;  %v2389_v25 = vadd.f32 %v2388_v23, %v1299_v22  ;;  %v3418_v26 = vpop.f32.mrf.mxu0 }
 0x1ae   :  { %v3612_v27 = vpop.f32.mrf.mxu1 }
 0x1af   :  { %2708 = vst.msk [vmem:[%s5344_s5 + $0x398] sm:$0xff] %vm2592_vm1, %v2579_v24  ;;  %v2578_v28 = vadd.f32 %v5087_v5, %v2389_v25  ;;  %v2404_v29 = vadd.f32 %v3612_v27, %v3418_v26  ;;  %v1309_v30 = vpop.f32.mrf.mxu0 }
 0x1b0   :  { %v2398_v31 = vpop.f32.mrf.mxu1 }
 0x1b1   :  { %2707 = vst.msk [vmem:[%s5344_s5 + $0x390] sm:$0xff] %vm2592_vm1, %v2578_v28  ;;  %v2581_v32 = vadd.f32 %v5087_v5, %v2404_v29  ;;  %v2399_v33 = vadd.f32 %v2398_v31, %v1309_v30  ;;  %v3421_v34 = vpop.f32.mrf.mxu0 }
 0x1b2   :  { %v3615_v35 = vpop.f32.mrf.mxu1 }
 0x1b3   :  { %2710 = vst.msk [vmem:[%s5344_s5 + $0x3a8] sm:$0xff] %vm2592_vm1, %v2581_v32  ;;  %v2580_v36 = vadd.f32 %v5087_v5, %v2399_v33  ;;  %v2414_v37 = vadd.f32 %v3615_v35, %v3421_v34  ;;  %v1319_v38 = vpop.f32.mrf.mxu0 }
 0x1b4   :  { %v2408_v39 = vpop.f32.mrf.mxu1 }
 0x1b5   :  { %2709 = vst.msk [vmem:[%s5344_s5 + $0x3a0] sm:$0xff] %vm2592_vm1, %v2580_v36  ;;  %v2583_v40 = vadd.f32 %v5087_v5, %v2414_v37  ;;  %v2409_v41 = vadd.f32 %v2408_v39, %v1319_v38  ;;  %v3424_v42 = vpop.f32.mrf.mxu0 }
 0x1b6   :  { %v3618_v43 = vpop.f32.mrf.mxu1 }
 0x1b7   :  { %2712 = vst.msk [vmem:[%s5344_s5 + $0x3b8] sm:$0xff] %vm2592_vm1, %v2583_v40  ;;  %v2582_v44 = vadd.f32 %v5087_v5, %v2409_v41  ;;  %v2424_v45 = vadd.f32 %v3618_v43, %v3424_v42  ;;  %v1329_v46 = vpop.f32.mrf.mxu0 }
 0x1b8   :  { %v2418_v47 = vpop.f32.mrf.mxu1 }
 0x1b9   :  { %2711 = vst.msk [vmem:[%s5344_s5 + $0x3b0] sm:$0xff] %vm2592_vm1, %v2582_v44  ;;  %v2585_v48 = vadd.f32 %v5087_v5, %v2424_v45  ;;  %v2419_v49 = vadd.f32 %v2418_v47, %v1329_v46  ;;  %v3427_v50 = vpop.f32.mrf.mxu0 }
 0x1ba   :  { %v3621_v51 = vpop.f32.mrf.mxu1 }
 0x1bb   :  { %2714 = vst.msk [vmem:[%s5344_s5 + $0x3c8] sm:$0xff] %vm2592_vm1, %v2585_v48  ;;  %v2584_v52 = vadd.f32 %v5087_v5, %v2419_v49  ;;  %v2434_v53 = vadd.f32 %v3621_v51, %v3427_v50  ;;  %v1339_v54 = vpop.f32.mrf.mxu0 }
 0x1bc   :  { %v2428_v55 = vpop.f32.mrf.mxu1 }
 0x1bd   :  { %2713 = vst.msk [vmem:[%s5344_s5 + $0x3c0] sm:$0xff] %vm2592_vm1, %v2584_v52  ;;  %v2587_v56 = vadd.f32 %v5087_v5, %v2434_v53  ;;  %v2429_v57 = vadd.f32 %v2428_v55, %v1339_v54  ;;  %v3430_v58 = vpop.f32.mrf.mxu0 }
 0x1be   :  { %v3624_v59 = vpop.f32.mrf.mxu1 }
 0x1bf   :  { %2716 = vst.msk [vmem:[%s5344_s5 + $0x3d8] sm:$0xff] %vm2592_vm1, %v2587_v56  ;;  %v2586_v60 = vadd.f32 %v5087_v5, %v2429_v57  ;;  %v2444_v61 = vadd.f32 %v3624_v59, %v3430_v58  ;;  %v1349_v62 = vpop.f32.mrf.mxu0 }
 0x1c0   :  { %v2438_v63 = vpop.f32.mrf.mxu1 }
 0x1c1   :  { %2715 = vst.msk [vmem:[%s5344_s5 + $0x3d0] sm:$0xff] %vm2592_vm1, %v2586_v60  ;;  %v2589_v0 = vadd.f32 %v5087_v5, %v2444_v61  ;;  %v2439_v1 = vadd.f32 %v2438_v63, %v1349_v62  ;;  %v3433_v2 = vpop.f32.mrf.mxu0 }
 0x1c2   :  { %v3627_v3 = vpop.f32.mrf.mxu1 }
 0x1c3   :  { %2718 = vst.msk [vmem:[%s5344_s5 + $0x3e8] sm:$0xff] %vm2592_vm1, %v2589_v0  ;;  %v2588_v4 = vadd.f32 %v5087_v5, %v2439_v1  ;;  %v2454_v6 = vadd.f32 %v3627_v3, %v3433_v2  ;;  %v1359_v7 = vpop.f32.mrf.mxu0 }
 0x1c4   :  { %v2448_v8 = vpop.f32.mrf.mxu1 }
 0x1c5   :  { %2717 = vst.msk [vmem:[%s5344_s5 + $0x3e0] sm:$0xff] %vm2592_vm1, %v2588_v4  ;;  %v2591_v9 = vadd.f32 %v5087_v5, %v2454_v6  ;;  %v2449_v10 = vadd.f32 %v2448_v8, %v1359_v7 }
 0x1c7   :  { %2720 = vst.msk [vmem:[%s5344_s5 + $0x3f8] sm:$0xff] %vm2592_vm1, %v2591_v9  ;;  %v2590_v11 = vadd.f32 %v5087_v5, %v2449_v10 }
 0x1c9   :  { %2719 = vst.msk [vmem:[%s5344_s5 + $0x3f0] sm:$0xff] %vm2592_vm1, %v2590_v11 }

</bundles_post_ra>
